<compile_context>
chip_gen: v7x
topology: tpu7x:2x2x1
jax: 0.10.0
libtpu: 0.0.40
codegen_flags: <defaults>
</compile_context>

<pallas_src>
from functools import partial

import jax
import jax.numpy as jnp
from jax.experimental import pallas as pl
from jax.experimental.pallas import tpu as pltpu


def _round_up(x, m):
    return (x + m - 1) // m * m


# ----------------------------------------------------------------------------- kernel bodies
def _recurrence_steps(T, B, Hp, emb_ref, ctx_ref, h0_ref, wih_e_ref, wih_c_ref,
                      whh_ref, bias_ref, bhhn_ref, gi_ref, hseq_ref, hfin_ref):
    """Shared GRU recurrence. Fills hseq_ref (T*B, Hp) and hfin_ref (B, Hp).

    Weight layout (prepared once in prepare_params):
      wih_e : (E,  3*Hp)  token->gate weights, gate g in lanes [g*Hp, g*Hp+H)
      wih_c : (H,  3*Hp)  context->gate weights
      whh   : (Hp, 3*Hp)  hidden->gate weights (rows H..Hp zero)
      bias  : (1,  3*Hp)  b_ih (all gates) + b_hh folded for r,z; zeros in padding
      bhhn  : (1,  Hp)    b_hh of the n gate (must stay inside r*(gh_n + b))
    Padded lanes of h stay exactly zero (zero bias/weights in padding), so padding
    never leaks into the real lanes.
    """
    G3 = 3 * Hp

    # ---- batched, off-the-serial-chain gate-input precompute ----------------
    # One big matmul for the token part; the context part + biases once.
    gi_tok = jnp.dot(emb_ref[...], wih_e_ref[...],
                     preferred_element_type=jnp.float32)           # (T*B, 3*Hp)
    gi_ctx = (jnp.dot(ctx_ref[...], wih_c_ref[...],
                      preferred_element_type=jnp.float32)
              + bias_ref[...])                                     # (B, 3*Hp)
    for t in range(T):                      # one-time staging, off the chain
        gi_ref[t] = gi_tok[t * B:(t + 1) * B, :] + gi_ctx

    whh = whh_ref[...]                      # (Hp, 3*Hp) — loaded once
    bhh_n = bhhn_ref[...]                   # (1, Hp)
    h0 = h0_ref[...]                        # (B, Hp)

    def step(t, h):
        gi = gi_ref[t]                                            # aligned, off-chain load
        gh = jnp.dot(h, whh, preferred_element_type=jnp.float32)  # ONE fused matmul / step
        r = jax.nn.sigmoid(gi[:, 0:Hp] + gh[:, 0:Hp])
        z = jax.nn.sigmoid(gi[:, Hp:2 * Hp] + gh[:, Hp:2 * Hp])
        n = jnp.tanh(gi[:, 2 * Hp:G3] + r * (gh[:, 2 * Hp:G3] + bhh_n))
        h = (1.0 - z) * n + z * h
        hseq_ref[pl.ds(t * B, B), :] = h
        return h

    if T <= 16:
        h = h0
        for t in range(T):                  # fully unrolled for short sequences
            h = step(t, h)
    else:
        # Long sequences: keep live intermediates bounded (vreg pressure).
        h = jax.lax.fori_loop(0, T, step, h0)
    hfin_ref[...] = h


def _projection_steps(T, B, emb_ref, hseq_ref, ctxproj_ref, wo_e_ref, wo_h_ref,
                      logits_ref):
    """logits[t] = emb_t @ Wo_e + h_t @ Wo_h + (ctx @ Wo_c + b_o), batched over T*B."""
    acc = (jnp.dot(emb_ref[...], wo_e_ref[...], preferred_element_type=jnp.float32)
           + jnp.dot(hseq_ref[...], wo_h_ref[...], preferred_element_type=jnp.float32))
    ctx_part = ctxproj_ref[...]             # (B, tv) — precomputed once in the wrapper
    for t in range(T):                      # broadcast add (no concat replication)
        logits_ref[t] = (acc[t * B:(t + 1) * B, :] + ctx_part).astype(logits_ref.dtype)


# ----------------------------------------------------------------------------- kernels
def _gru_fused_kernel(emb_ref, ctx_ref, h0_ref, wih_e_ref, wih_c_ref, whh_ref,
                      bias_ref, bhhn_ref, wo_e_ref, wo_h_ref, ctxproj_ref,
                      logits_ref, hfin_ref, gi_ref, hseq_ref):
    """Recurrence + full vocab projection in one invocation (small-V path)."""
    T, B, _ = logits_ref.shape
    Hp = hfin_ref.shape[1]
    _recurrence_steps(T, B, Hp, emb_ref, ctx_ref, h0_ref, wih_e_ref, wih_c_ref,
                      whh_ref, bias_ref, bhhn_ref, gi_ref, hseq_ref, hfin_ref)
    _projection_steps(T, B, emb_ref, hseq_ref, ctxproj_ref, wo_e_ref, wo_h_ref,
                      logits_ref)


def _gru_recurrence_kernel(emb_ref, ctx_ref, h0_ref, wih_e_ref, wih_c_ref, whh_ref,
                           bias_ref, bhhn_ref, hseq_ref, hfin_ref, gi_ref):
    """Recurrence only (large-V split path); h_seq goes to HBM for the projection."""
    B, Hp = hfin_ref.shape
    T = gi_ref.shape[0]
    _recurrence_steps(T, B, Hp, emb_ref, ctx_ref, h0_ref, wih_e_ref, wih_c_ref,
                      whh_ref, bias_ref, bhhn_ref, gi_ref, hseq_ref, hfin_ref)


def _projection_kernel(emb_ref, hseq_ref, ctxproj_ref, wo_e_ref, wo_h_ref, logits_ref):
    """Vocab-tiled, fully parallel projection (large-V split path)."""
    T, B, _ = logits_ref.shape
    _projection_steps(T, B, emb_ref, hseq_ref, ctxproj_ref, wo_e_ref, wo_h_ref,
                      logits_ref)


# ----------------------------------------------------------------------------- param prep
def prepare_params(params):
    """One-time weight preparation: gate stacking, lane padding, vocab padding.

    Never call this per step.  (To use bf16 MXU operands, cast the returned arrays
    to bf16 here and loosen the parity tolerance.)
    """
    emb = params["emb"]
    V, E = emb.shape
    H = params["w_hh"].shape[1]
    Hp = _round_up(H, 128)                  # lane-pad each gate block to 128 lanes
    G3 = 3 * Hp
    Vp = _round_up(V, 128)                  # lane-dense logits slab
    w_ih, w_hh = params["w_ih"], params["w_hh"]
    b_ih, b_hh = params["b_ih"], params["b_hh"]
    w_out, b_out = params["w_out"], params["b_out"]

    def stack_gates(w, rows):
        # (3H, K) -> (rows, 3*Hp), gate g (r,z,n) occupies lanes [g*Hp, g*Hp+H)
        K = w.shape[1]
        out = jnp.zeros((rows, G3), jnp.float32)
        for g in range(3):
            out = out.at[:K, g * Hp:g * Hp + H].set(w[g * H:(g + 1) * H, :].T)
        return out

    wih_e = stack_gates(w_ih[:, :E], E)                       # (E,  3*Hp)
    wih_c = stack_gates(w_ih[:, E:], H)                       # (H,  3*Hp)
    whh = stack_gates(w_hh, Hp)                               # (Hp, 3*Hp)

    # b_ih for all gates, with b_hh folded in for r and z (commutes); b_hh[n] separate.
    bias = jnp.zeros((1, G3), jnp.float32)
    for g in range(3):
        bias = bias.at[0, g * Hp:g * Hp + H].set(b_ih[g * H:(g + 1) * H])
    bias = bias.at[0, 0:H].add(b_hh[0:H])                     # r
    bias = bias.at[0, Hp:Hp + H].add(b_hh[H:2 * H])           # z
    bhh_n = jnp.zeros((1, Hp), jnp.float32).at[0, :H].set(b_hh[2 * H:3 * H])

    def pad_vocab(w):                                         # (K, V) -> (K, Vp)
        return jnp.zeros((w.shape[0], Vp), jnp.float32).at[:, :V].set(w)

    wo_e = pad_vocab(w_out[:, :E].T)                          # (E,  Vp)
    wo_h = jnp.zeros((Hp, Vp), jnp.float32).at[:H, :V].set(w_out[:, E:E + H].T)
    wo_c = pad_vocab(w_out[:, E + H:].T)                      # (H,  Vp)
    bo = jnp.zeros((1, Vp), jnp.float32).at[0, :V].set(b_out)

    return dict(emb=emb, wih_e=wih_e, wih_c=wih_c, whh=whh, bias=bias, bhh_n=bhh_n,
                wo_e=wo_e, wo_h=wo_h, wo_c=wo_c, bo=bo)


# ----------------------------------------------------------------------------- tiling policy
def _pick_vocab_tile(Vp, T, B, E, Hp):
    """Largest 128-multiple tile of the (padded) vocab axis that (a) divides Vp,
    (b) keeps >= 2 grid steps when possible (so v7x's two TensorCores both get work),
    and (c) keeps the working set inside a conservative VMEM budget that fits the
    default scoped limit on every generation (v5e 16 MiB ... v7x 64 MiB total)."""
    budget = 12 * 2 ** 20
    resident = 4 * (T * B) * (E + Hp)              # emb_flat + h_seq stay resident
    best = 128
    for tv in range(128, min(Vp, 2048) + 1, 128):
        if Vp % tv:
            continue
        if Vp // tv < 2 and Vp > 128:
            continue                               # insist on >= 2 grid steps (v7x)
        per_tile = 4 * tv * (2 * (E + Hp + B) + 2 * T * B)   # dbl-buffered in + out
        if resident + per_tile <= budget:
            best = tv
    return best
    # TODO(synk): for production TB (thousands of rows) add a second grid axis over
    # T*B and set vmem_limit_bytes explicitly; not needed at these sizes.


# ----------------------------------------------------------------------------- wrapper
@partial(jax.jit, static_argnames=("use_split",))
def decoder_forward(prepped, inputs, encoder_output, encoder_mask, hidden=None,
                    *, use_split=None):
    del encoder_mask                        # unused in the reference forward
    T, B = inputs.shape
    V, E = prepped["emb"].shape
    H = prepped["wih_c"].shape[0]
    Hp, G3 = prepped["whh"].shape
    Vp = prepped["wo_e"].shape[1]
    TB = T * B

    # The PyTorch loop embeds the *previous* token at every step except step 0.
    tokens = jnp.concatenate([inputs[:1], inputs[:-1]], axis=0)          # (T, B)
    emb_flat = jnp.take(prepped["emb"], tokens.reshape(-1), axis=0)      # (T*B, E)
    ctx = encoder_output[-1].astype(jnp.float32)                         # (B, H)
    if hidden is None:
        h0 = jnp.zeros((B, Hp), jnp.float32)
    else:
        h0 = jnp.zeros((B, Hp), jnp.float32).at[:, :H].set(
            hidden.reshape(B, H).astype(jnp.float32))
    # ctx @ Wo_c + b_o is constant over timesteps AND vocab tiles: compute it once.
    ctx_proj = jnp.dot(ctx, prepped["wo_c"]) + prepped["bo"]             # (B, Vp)

    rec_in_specs = [
        pl.BlockSpec((TB, E), lambda i: (0, 0)),          # emb_flat
        pl.BlockSpec((B, H), lambda i: (0, 0)),           # ctx
        pl.BlockSpec((B, Hp), lambda i: (0, 0)),          # h0 (lane padded)
        pl.BlockSpec((E, G3), lambda i: (0, 0)),          # wih_e (gate stacked)
        pl.BlockSpec((H, G3), lambda i: (0, 0)),          # wih_c
        pl.BlockSpec((Hp, G3), lambda i: (0, 0)),         # whh
        pl.BlockSpec((1, G3), lambda i: (0, 0)),          # b_ih (+ folded b_hh[r,z])
        pl.BlockSpec((1, Hp), lambda i: (0, 0)),          # b_hh[n]
    ]
    rec_args = (emb_flat, ctx, h0, prepped["wih_e"], prepped["wih_c"], prepped["whh"],
                prepped["bias"], prepped["bhh_n"])

    if use_split is None:                   # static (shape-only) decision at trace time
        fused_bytes = 4 * (2 * (TB * E + (E + H + Hp) * G3 + (E + Hp + B) * Vp
                                + T * B * Vp + B * Hp) + T * B * G3 + TB * Hp)
        use_split = fused_bytes > 12 * 2 ** 20

    if not use_split:
        # --------- Path A: single fused kernel (recurrence + projection) ----------
        grid_spec = pltpu.PrefetchScalarGridSpec(
            num_scalar_prefetch=0, grid=(1,),
            in_specs=rec_in_specs + [
                pl.BlockSpec((E, Vp), lambda i: (0, 0)),   # wo_e
                pl.BlockSpec((Hp, Vp), lambda i: (0, 0)),  # wo_h
                pl.BlockSpec((B, Vp), lambda i: (0, 0)),   # ctx @ Wo_c + b_o
            ],
            out_specs=[pl.BlockSpec((T, B, Vp), lambda i: (0, 0, 0)),
                       pl.BlockSpec((B, Hp), lambda i: (0, 0))],
            scratch_shapes=[pltpu.VMEM((T, B, G3), jnp.float32),   # staged gate inputs
                            pltpu.VMEM((TB, Hp), jnp.float32)])    # h_seq stays in VMEM
        logits_p, hfin_p = pl.pallas_call(
            _gru_fused_kernel,
            out_shape=(jax.ShapeDtypeStruct((T, B, Vp), jnp.float32),
                       jax.ShapeDtypeStruct((B, Hp), jnp.float32)),
            grid_spec=grid_spec,
            compiler_params=pltpu.CompilerParams(dimension_semantics=("arbitrary",)),
        )(*rec_args, prepped["wo_e"], prepped["wo_h"], ctx_proj)
    else:
        # --------- Path B: recurrence kernel + vocab-tiled parallel projection ----
        rec_spec = pltpu.PrefetchScalarGridSpec(
            num_scalar_prefetch=0, grid=(1,),
            in_specs=rec_in_specs,
            out_specs=[pl.BlockSpec((TB, Hp), lambda i: (0, 0)),
                       pl.BlockSpec((B, Hp), lambda i: (0, 0))],
            scratch_shapes=[pltpu.VMEM((T, B, G3), jnp.float32)])
        hseq, hfin_p = pl.pallas_call(
            _gru_recurrence_kernel,
            out_shape=(jax.ShapeDtypeStruct((TB, Hp), jnp.float32),
                       jax.ShapeDtypeStruct((B, Hp), jnp.float32)),
            grid_spec=rec_spec,
            compiler_params=pltpu.CompilerParams(dimension_semantics=("arbitrary",)),
        )(*rec_args)

        tv = _pick_vocab_tile(Vp, T, B, E, Hp)
        nv = Vp // tv
        proj_spec = pltpu.PrefetchScalarGridSpec(
            num_scalar_prefetch=0, grid=(nv,),
            in_specs=[
                pl.BlockSpec((TB, E), lambda v: (0, 0)),      # resident across V tiles
                pl.BlockSpec((TB, Hp), lambda v: (0, 0)),     # resident across V tiles
                pl.BlockSpec((B, tv), lambda v: (0, v)),      # ctx projection tile
                pl.BlockSpec((E, tv), lambda v: (0, v)),      # wo_e tile
                pl.BlockSpec((Hp, tv), lambda v: (0, v)),     # wo_h tile
            ],
            out_specs=pl.BlockSpec((T, B, tv), lambda v: (0, 0, v)))
        logits_p = pl.pallas_call(
            _projection_kernel,
            out_shape=jax.ShapeDtypeStruct((T, B, Vp), jnp.float32),
            grid_spec=proj_spec,
            compiler_params=pltpu.CompilerParams(dimension_semantics=("parallel",)),
        )(emb_flat, hseq, ctx_proj, prepped["wo_e"], prepped["wo_h"])

    logits = logits_p[..., :V]              # strip vocab padding
    hidden_out = hfin_p[:, :H][None]        # (num_layers=1, B, H)
    return logits, hidden_out


# ----------------------------------------------------------------------------- init / ref
def init_params(key, vocab_size, emb_dim, hidden_dim):
    """Deterministic init mimicking PyTorch defaults (Embedding N(0,1), GRU/Linear uniform)."""
    ks = jax.random.split(key, 7)
    kgru = 1.0 / jnp.sqrt(hidden_dim)
    klin = 1.0 / jnp.sqrt(hidden_dim * 2 + emb_dim)
    return dict(
        emb=jax.random.normal(ks[0], (vocab_size, emb_dim), jnp.float32),
        w_ih=jax.random.uniform(ks[1], (3 * hidden_dim, emb_dim + hidden_dim),
                                jnp.float32, -kgru, kgru),
        w_hh=jax.random.uniform(ks[2], (3 * hidden_dim, hidden_dim),
                                jnp.float32, -kgru, kgru),
        b_ih=jax.random.uniform(ks[3], (3 * hidden_dim,), jnp.float32, -kgru, kgru),
        b_hh=jax.random.uniform(ks[4], (3 * hidden_dim,), jnp.float32, -kgru, kgru),
        w_out=jax.random.uniform(ks[5], (vocab_size, hidden_dim * 2 + emb_dim),
                                 jnp.float32, -klin, klin),
        b_out=jax.random.uniform(ks[6], (vocab_size,), jnp.float32, -klin, klin),
    )


def reference_forward(params, inputs, encoder_output, hidden=None):
    """Pure-JAX eval-mode reference matching the PyTorch forward."""
    T, B = inputs.shape
    H = params["w_hh"].shape[1]
    w_ih, w_hh = params["w_ih"], params["w_hh"]
    b_ih, b_hh = params["b_ih"], params["b_hh"]
    w_out, b_out = params["w_out"], params["b_out"]

    tokens = jnp.concatenate([inputs[:1], inputs[:-1]], axis=0)
    emb_seq = jnp.take(params["emb"], tokens, axis=0)
    ctx = encoder_output[-1]
    h = (jnp.zeros((B, H), jnp.float32) if hidden is None
         else hidden.reshape(B, H).astype(jnp.float32))

    def step(h, emb):
        x = jnp.concatenate([emb, ctx], axis=1)
        gi = x @ w_ih.T + b_ih
        gh = h @ w_hh.T + b_hh
        r = jax.nn.sigmoid(gi[:, :H] + gh[:, :H])
        z = jax.nn.sigmoid(gi[:, H:2 * H] + gh[:, H:2 * H])
        n = jnp.tanh(gi[:, 2 * H:] + r * gh[:, 2 * H:])
        h_new = (1.0 - z) * n + z * h
        out = jnp.concatenate([emb, h_new, ctx], axis=1)
        return h_new, out

    h_fin, outs = jax.lax.scan(step, h, emb_seq)
    logits = outs @ w_out.T + b_out
    return logits, h_fin[None]


if __name__ == "__main__":
    def run_case(name, vocab_size, emb_dim, hidden_dim, T, B, S, use_split):
        key = jax.random.PRNGKey(0)
        kp, ki, ke = jax.random.split(key, 3)
        params = init_params(kp, vocab_size, emb_dim, hidden_dim)
        prepped = prepare_params(params)     # one-time weight prep
        inputs = jax.random.randint(ki, (T, B), 0, vocab_size, jnp.int32)
        encoder_output = jax.random.normal(ke, (S, B, hidden_dim), jnp.float32)
        encoder_mask = jnp.ones((S, B), jnp.bool_)   # unused; signature parity only

        logits, hidden = decoder_forward(prepped, inputs, encoder_output, encoder_mask,
                                         use_split=use_split)
        jax.block_until_ready((logits, hidden))

        ref_logits, ref_hidden = reference_forward(params, inputs, encoder_output)
        assert logits.shape == (T, B, vocab_size), f"{name}: bad logits shape"
        assert hidden.shape == (1, B, hidden_dim), f"{name}: bad hidden shape"
        assert jnp.allclose(logits, ref_logits, atol=1e-4, rtol=1e-4), f"{name}: logits mismatch"
        assert jnp.allclose(hidden, ref_hidden, atol=1e-4, rtol=1e-4), f"{name}: hidden mismatch"

    # Small config -> fused single-kernel path (auto), fully unrolled recurrence.
    run_case("fused", vocab_size=128, emb_dim=32, hidden_dim=64, T=8, B=4, S=6,
             use_split=None)
    # Ragged-vocab config -> split path (V padded to 128 multiple, vocab-tiled
    # "parallel" projection grid) and fori_loop recurrence (T > 16).
    run_case("split", vocab_size=600, emb_dim=32, hidden_dim=64, T=20, B=8, S=5,
             use_split=True)

    print("KERNEL_OK")
</pallas_src>

<mosaic_0001>
module attributes {stable_mosaic.version = 11 : i64} {
  func.func @_gru_fused_kernel(%arg0: i32, %arg1: memref<32x32xf32, #tpu.memory_space<vmem>>, %arg2: memref<4x64xf32, #tpu.memory_space<vmem>>, %arg3: memref<4x128xf32, #tpu.memory_space<vmem>>, %arg4: memref<32x384xf32, #tpu.memory_space<vmem>>, %arg5: memref<64x384xf32, #tpu.memory_space<vmem>>, %arg6: memref<128x384xf32, #tpu.memory_space<vmem>>, %arg7: memref<1x384xf32, #tpu.memory_space<vmem>>, %arg8: memref<1x128xf32, #tpu.memory_space<vmem>>, %arg9: memref<32x128xf32, #tpu.memory_space<vmem>>, %arg10: memref<128x128xf32, #tpu.memory_space<vmem>>, %arg11: memref<4x128xf32, #tpu.memory_space<vmem>>, %arg12: memref<8x4x128xf32, #tpu.memory_space<vmem>>, %arg13: memref<4x128xf32, #tpu.memory_space<vmem>>, %arg14: memref<8x4x384xf32, #tpu.memory_space<vmem>>, %arg15: memref<32x128xf32, #tpu.memory_space<vmem>>) attributes {dimension_semantics = [#tpu.dimension_semantics<arbitrary>], iteration_bounds = array<i64: 1>, scalar_prefetch = 0 : i64, scratch_operands = 2 : i64, tpu.core_type = #tpu.core_type<tc>, window_params = [{pipeline_mode = #tpu.pipeline_mode<synchronous>, transform_indices = @transform_0, window_bounds = array<i64: 32, 32>}, {pipeline_mode = #tpu.pipeline_mode<synchronous>, transform_indices = @transform_1, window_bounds = array<i64: 4, 64>}, {pipeline_mode = #tpu.pipeline_mode<synchronous>, transform_indices = @transform_2, window_bounds = array<i64: 4, 128>}, {pipeline_mode = #tpu.pipeline_mode<synchronous>, transform_indices = @transform_3, window_bounds = array<i64: 32, 384>}, {pipeline_mode = #tpu.pipeline_mode<synchronous>, transform_indices = @transform_4, window_bounds = array<i64: 64, 384>}, {pipeline_mode = #tpu.pipeline_mode<synchronous>, transform_indices = @transform_5, window_bounds = array<i64: 128, 384>}, {pipeline_mode = #tpu.pipeline_mode<synchronous>, transform_indices = @transform_6, window_bounds = array<i64: 1, 384>}, {pipeline_mode = #tpu.pipeline_mode<synchronous>, transform_indices = @transform_7, window_bounds = array<i64: 1, 128>}, {pipeline_mode = #tpu.pipeline_mode<synchronous>, transform_indices = @transform_8, window_bounds = array<i64: 32, 128>}, {pipeline_mode = #tpu.pipeline_mode<synchronous>, transform_indices = @transform_9, window_bounds = array<i64: 128, 128>}, {pipeline_mode = #tpu.pipeline_mode<synchronous>, transform_indices = @transform_10, window_bounds = array<i64: 4, 128>}, {pipeline_mode = #tpu.pipeline_mode<synchronous>, transform_indices = @transform_11, window_bounds = array<i64: 8, 4, 128>}, {pipeline_mode = #tpu.pipeline_mode<synchronous>, transform_indices = @transform_12, window_bounds = array<i64: 4, 128>}]} {
    %c0 = arith.constant 0 : index
    %c0_0 = arith.constant 0 : index
    %0 = vector.load %arg1[%c0, %c0_0] : memref<32x32xf32, #tpu.memory_space<vmem>>, vector<32x32xf32>
    %c0_1 = arith.constant 0 : index
    %c0_2 = arith.constant 0 : index
    %1 = vector.load %arg4[%c0_1, %c0_2] : memref<32x384xf32, #tpu.memory_space<vmem>>, vector<32x384xf32>
    %cst = arith.constant dense<0.000000e+00> : vector<32x384xf32>
    %2 = tpu.matmul %0, %1, %cst {dimension_numbers = #tpu.dot_dimension_numbers<[1], [0], [0], [1], [0, 0, 1, 1], [], []>} : vector<32x32xf32>, vector<32x384xf32>, vector<32x384xf32> -> vector<32x384xf32>
    %c0_3 = arith.constant 0 : index
    %c0_4 = arith.constant 0 : index
    %3 = vector.load %arg2[%c0_3, %c0_4] : memref<4x64xf32, #tpu.memory_space<vmem>>, vector<4x64xf32>
    %c0_5 = arith.constant 0 : index
    %c0_6 = arith.constant 0 : index
    %4 = vector.load %arg5[%c0_5, %c0_6] : memref<64x384xf32, #tpu.memory_space<vmem>>, vector<64x384xf32>
    %cst_7 = arith.constant dense<0.000000e+00> : vector<4x384xf32>
    %5 = tpu.matmul %3, %4, %cst_7 {dimension_numbers = #tpu.dot_dimension_numbers<[1], [0], [0], [1], [0, 0, 1, 1], [], []>} : vector<4x64xf32>, vector<64x384xf32>, vector<4x384xf32> -> vector<4x384xf32>
    %c0_8 = arith.constant 0 : index
    %c0_9 = arith.constant 0 : index
    %6 = vector.load %arg7[%c0_8, %c0_9] : memref<1x384xf32, #tpu.memory_space<vmem>>, vector<1x384xf32>
    %7 = vector.broadcast %6 : vector<1x384xf32> to vector<4x384xf32>
    %8 = arith.addf %5, %7 : vector<4x384xf32>
    %9 = vector.extract_strided_slice %2 {offsets = [0, 0], sizes = [4, 384], strides = [1, 1]} : vector<32x384xf32> to vector<4x384xf32>
    %10 = arith.addf %9, %8 : vector<4x384xf32>
    %c0_10 = arith.constant 0 : index
    %c0_11 = arith.constant 0 : index
    %c0_12 = arith.constant 0 : index
    %11 = vector.load %arg14[%c0_10, %c0_11, %c0_12] : memref<8x4x384xf32, #tpu.memory_space<vmem>>, vector<1x4x384xf32>
    %12 = vector.shape_cast %11 : vector<1x4x384xf32> to vector<4x384xf32>
    %13 = vector.shape_cast %10 : vector<4x384xf32> to vector<1x4x384xf32>
    tpu.vector_store %arg14[%c0_10, %c0_11, %c0_12], %13 {strides = array<i32>} : memref<8x4x384xf32, #tpu.memory_space<vmem>>, vector<1x4x384xf32>,
    %14 = vector.extract_strided_slice %2 {offsets = [4, 0], sizes = [4, 384], strides = [1, 1]} : vector<32x384xf32> to vector<4x384xf32>
    %15 = arith.addf %14, %8 : vector<4x384xf32>
    %c1 = arith.constant 1 : index
    %c0_13 = arith.constant 0 : index
    %c0_14 = arith.constant 0 : index
    %16 = vector.load %arg14[%c1, %c0_13, %c0_14] : memref<8x4x384xf32, #tpu.memory_space<vmem>>, vector<1x4x384xf32>
    %17 = vector.shape_cast %16 : vector<1x4x384xf32> to vector<4x384xf32>
    %18 = vector.shape_cast %15 : vector<4x384xf32> to vector<1x4x384xf32>
    tpu.vector_store %arg14[%c1, %c0_13, %c0_14], %18 {strides = array<i32>} : memref<8x4x384xf32, #tpu.memory_space<vmem>>, vector<1x4x384xf32>,
    %19 = vector.extract_strided_slice %2 {offsets = [8, 0], sizes = [4, 384], strides = [1, 1]} : vector<32x384xf32> to vector<4x384xf32>
    %20 = arith.addf %19, %8 : vector<4x384xf32>
    %c2 = arith.constant 2 : index
    %c0_15 = arith.constant 0 : index
    %c0_16 = arith.constant 0 : index
    %21 = vector.load %arg14[%c2, %c0_15, %c0_16] : memref<8x4x384xf32, #tpu.memory_space<vmem>>, vector<1x4x384xf32>
    %22 = vector.shape_cast %21 : vector<1x4x384xf32> to vector<4x384xf32>
    %23 = vector.shape_cast %20 : vector<4x384xf32> to vector<1x4x384xf32>
    tpu.vector_store %arg14[%c2, %c0_15, %c0_16], %23 {strides = array<i32>} : memref<8x4x384xf32, #tpu.memory_space<vmem>>, vector<1x4x384xf32>,
    %24 = vector.extract_strided_slice %2 {offsets = [12, 0], sizes = [4, 384], strides = [1, 1]} : vector<32x384xf32> to vector<4x384xf32>
    %25 = arith.addf %24, %8 : vector<4x384xf32>
    %c3 = arith.constant 3 : index
    %c0_17 = arith.constant 0 : index
    %c0_18 = arith.constant 0 : index
    %26 = vector.load %arg14[%c3, %c0_17, %c0_18] : memref<8x4x384xf32, #tpu.memory_space<vmem>>, vector<1x4x384xf32>
    %27 = vector.shape_cast %26 : vector<1x4x384xf32> to vector<4x384xf32>
    %28 = vector.shape_cast %25 : vector<4x384xf32> to vector<1x4x384xf32>
    tpu.vector_store %arg14[%c3, %c0_17, %c0_18], %28 {strides = array<i32>} : memref<8x4x384xf32, #tpu.memory_space<vmem>>, vector<1x4x384xf32>,
    %29 = vector.extract_strided_slice %2 {offsets = [16, 0], sizes = [4, 384], strides = [1, 1]} : vector<32x384xf32> to vector<4x384xf32>
    %30 = arith.addf %29, %8 : vector<4x384xf32>
    %c4 = arith.constant 4 : index
    %c0_19 = arith.constant 0 : index
    %c0_20 = arith.constant 0 : index
    %31 = vector.load %arg14[%c4, %c0_19, %c0_20] : memref<8x4x384xf32, #tpu.memory_space<vmem>>, vector<1x4x384xf32>
    %32 = vector.shape_cast %31 : vector<1x4x384xf32> to vector<4x384xf32>
    %33 = vector.shape_cast %30 : vector<4x384xf32> to vector<1x4x384xf32>
    tpu.vector_store %arg14[%c4, %c0_19, %c0_20], %33 {strides = array<i32>} : memref<8x4x384xf32, #tpu.memory_space<vmem>>, vector<1x4x384xf32>,
    %34 = vector.extract_strided_slice %2 {offsets = [20, 0], sizes = [4, 384], strides = [1, 1]} : vector<32x384xf32> to vector<4x384xf32>
    %35 = arith.addf %34, %8 : vector<4x384xf32>
    %c5 = arith.constant 5 : index
    %c0_21 = arith.constant 0 : index
    %c0_22 = arith.constant 0 : index
    %36 = vector.load %arg14[%c5, %c0_21, %c0_22] : memref<8x4x384xf32, #tpu.memory_space<vmem>>, vector<1x4x384xf32>
    %37 = vector.shape_cast %36 : vector<1x4x384xf32> to vector<4x384xf32>
    %38 = vector.shape_cast %35 : vector<4x384xf32> to vector<1x4x384xf32>
    tpu.vector_store %arg14[%c5, %c0_21, %c0_22], %38 {strides = array<i32>} : memref<8x4x384xf32, #tpu.memory_space<vmem>>, vector<1x4x384xf32>,
    %39 = vector.extract_strided_slice %2 {offsets = [24, 0], sizes = [4, 384], strides = [1, 1]} : vector<32x384xf32> to vector<4x384xf32>
    %40 = arith.addf %39, %8 : vector<4x384xf32>
    %c6 = arith.constant 6 : index
    %c0_23 = arith.constant 0 : index
    %c0_24 = arith.constant 0 : index
    %41 = vector.load %arg14[%c6, %c0_23, %c0_24] : memref<8x4x384xf32, #tpu.memory_space<vmem>>, vector<1x4x384xf32>
    %42 = vector.shape_cast %41 : vector<1x4x384xf32> to vector<4x384xf32>
    %43 = vector.shape_cast %40 : vector<4x384xf32> to vector<1x4x384xf32>
    tpu.vector_store %arg14[%c6, %c0_23, %c0_24], %43 {strides = array<i32>} : memref<8x4x384xf32, #tpu.memory_space<vmem>>, vector<1x4x384xf32>,
    %44 = vector.extract_strided_slice %2 {offsets = [28, 0], sizes = [4, 384], strides = [1, 1]} : vector<32x384xf32> to vector<4x384xf32>
    %45 = arith.addf %44, %8 : vector<4x384xf32>
    %c7 = arith.constant 7 : index
    %c0_25 = arith.constant 0 : index
    %c0_26 = arith.constant 0 : index
    %46 = vector.load %arg14[%c7, %c0_25, %c0_26] : memref<8x4x384xf32, #tpu.memory_space<vmem>>, vector<1x4x384xf32>
    %47 = vector.shape_cast %46 : vector<1x4x384xf32> to vector<4x384xf32>
    %48 = vector.shape_cast %45 : vector<4x384xf32> to vector<1x4x384xf32>
    tpu.vector_store %arg14[%c7, %c0_25, %c0_26], %48 {strides = array<i32>} : memref<8x4x384xf32, #tpu.memory_space<vmem>>, vector<1x4x384xf32>,
    %c0_27 = arith.constant 0 : index
    %c0_28 = arith.constant 0 : index
    %49 = vector.load %arg6[%c0_27, %c0_28] : memref<128x384xf32, #tpu.memory_space<vmem>>, vector<128x384xf32>
    %c0_29 = arith.constant 0 : index
    %c0_30 = arith.constant 0 : index
    %50 = vector.load %arg8[%c0_29, %c0_30] : memref<1x128xf32, #tpu.memory_space<vmem>>, vector<1x128xf32>
    %c0_31 = arith.constant 0 : index
    %c0_32 = arith.constant 0 : index
    %51 = vector.load %arg3[%c0_31, %c0_32] : memref<4x128xf32, #tpu.memory_space<vmem>>, vector<4x128xf32>
    %c0_33 = arith.constant 0 : index
    %c0_34 = arith.constant 0 : index
    %c0_35 = arith.constant 0 : index
    %52 = vector.load %arg14[%c0_33, %c0_34, %c0_35] : memref<8x4x384xf32, #tpu.memory_space<vmem>>, vector<1x4x384xf32>
    %53 = vector.shape_cast %52 : vector<1x4x384xf32> to vector<4x384xf32>
    %cst_36 = arith.constant dense<0.000000e+00> : vector<4x384xf32>
    %54 = tpu.matmul %51, %49, %cst_36 {dimension_numbers = #tpu.dot_dimension_numbers<[1], [0], [0], [1], [0, 0, 1, 1], [], []>} : vector<4x128xf32>, vector<128x384xf32>, vector<4x384xf32> -> vector<4x384xf32>
    %55 = vector.extract_strided_slice %53 {offsets = [0, 0], sizes = [4, 128], strides = [1, 1]} : vector<4x384xf32> to vector<4x128xf32>
    %56 = vector.extract_strided_slice %54 {offsets = [0, 0], sizes = [4, 128], strides = [1, 1]} : vector<4x384xf32> to vector<4x128xf32>
    %57 = arith.addf %55, %56 : vector<4x128xf32>
    %58 = arith.negf %57 : vector<4x128xf32>
    %59 = math.exp %58 : vector<4x128xf32>
    %cst_37 = arith.constant 1.000000e+00 : f32
    %60 = vector.broadcast %cst_37 : f32 to vector<4x128xf32>
    %61 = arith.addf %60, %59 : vector<4x128xf32>
    %62 = arith.divf %60, %61 : vector<4x128xf32>
    %63 = vector.extract_strided_slice %53 {offsets = [0, 128], sizes = [4, 128], strides = [1, 1]} : vector<4x384xf32> to vector<4x128xf32>
    %64 = vector.extract_strided_slice %54 {offsets = [0, 128], sizes = [4, 128], strides = [1, 1]} : vector<4x384xf32> to vector<4x128xf32>
    %65 = arith.addf %63, %64 : vector<4x128xf32>
    %66 = arith.negf %65 : vector<4x128xf32>
    %67 = math.exp %66 : vector<4x128xf32>
    %cst_38 = arith.constant 1.000000e+00 : f32
    %68 = vector.broadcast %cst_38 : f32 to vector<4x128xf32>
    %69 = arith.addf %68, %67 : vector<4x128xf32>
    %70 = arith.divf %68, %69 : vector<4x128xf32>
    %71 = vector.extract_strided_slice %53 {offsets = [0, 256], sizes = [4, 128], strides = [1, 1]} : vector<4x384xf32> to vector<4x128xf32>
    %72 = vector.extract_strided_slice %54 {offsets = [0, 256], sizes = [4, 128], strides = [1, 1]} : vector<4x384xf32> to vector<4x128xf32>
    %73 = vector.broadcast %50 : vector<1x128xf32> to vector<4x128xf32>
    %74 = arith.addf %72, %73 : vector<4x128xf32>
    %75 = arith.mulf %62, %74 : vector<4x128xf32>
    %76 = arith.addf %71, %75 : vector<4x128xf32>
    %77 = math.tanh %76 : vector<4x128xf32>
    %cst_39 = arith.constant 1.000000e+00 : f32
    %78 = vector.broadcast %cst_39 : f32 to vector<4x128xf32>
    %79 = arith.subf %78, %70 : vector<4x128xf32>
    %80 = arith.mulf %79, %77 : vector<4x128xf32>
    %81 = arith.mulf %70, %51 : vector<4x128xf32>
    %82 = arith.addf %80, %81 : vector<4x128xf32>
    %c0_40 = arith.constant 0 : index
    %c0_41 = arith.constant 0 : index
    %83 = vector.load %arg15[%c0_40, %c0_41] : memref<32x128xf32, #tpu.memory_space<vmem>>, vector<4x128xf32>
    tpu.vector_store %arg15[%c0_40, %c0_41], %82 {strides = array<i32>} : memref<32x128xf32, #tpu.memory_space<vmem>>, vector<4x128xf32>,
    %c1_42 = arith.constant 1 : index
    %c0_43 = arith.constant 0 : index
    %c0_44 = arith.constant 0 : index
    %84 = vector.load %arg14[%c1_42, %c0_43, %c0_44] : memref<8x4x384xf32, #tpu.memory_space<vmem>>, vector<1x4x384xf32>
    %85 = vector.shape_cast %84 : vector<1x4x384xf32> to vector<4x384xf32>
    %cst_45 = arith.constant dense<0.000000e+00> : vector<4x384xf32>
    %86 = tpu.matmul %82, %49, %cst_45 {dimension_numbers = #tpu.dot_dimension_numbers<[1], [0], [0], [1], [0, 0, 1, 1], [], []>} : vector<4x128xf32>, vector<128x384xf32>, vector<4x384xf32> -> vector<4x384xf32>
    %87 = vector.extract_strided_slice %85 {offsets = [0, 0], sizes = [4, 128], strides = [1, 1]} : vector<4x384xf32> to vector<4x128xf32>
    %88 = vector.extract_strided_slice %86 {offsets = [0, 0], sizes = [4, 128], strides = [1, 1]} : vector<4x384xf32> to vector<4x128xf32>
    %89 = arith.addf %87, %88 : vector<4x128xf32>
    %90 = arith.negf %89 : vector<4x128xf32>
    %91 = math.exp %90 : vector<4x128xf32>
    %cst_46 = arith.constant 1.000000e+00 : f32
    %92 = vector.broadcast %cst_46 : f32 to vector<4x128xf32>
    %93 = arith.addf %92, %91 : vector<4x128xf32>
    %94 = arith.divf %92, %93 : vector<4x128xf32>
    %95 = vector.extract_strided_slice %85 {offsets = [0, 128], sizes = [4, 128], strides = [1, 1]} : vector<4x384xf32> to vector<4x128xf32>
    %96 = vector.extract_strided_slice %86 {offsets = [0, 128], sizes = [4, 128], strides = [1, 1]} : vector<4x384xf32> to vector<4x128xf32>
    %97 = arith.addf %95, %96 : vector<4x128xf32>
    %98 = arith.negf %97 : vector<4x128xf32>
    %99 = math.exp %98 : vector<4x128xf32>
    %cst_47 = arith.constant 1.000000e+00 : f32
    %100 = vector.broadcast %cst_47 : f32 to vector<4x128xf32>
    %101 = arith.addf %100, %99 : vector<4x128xf32>
    %102 = arith.divf %100, %101 : vector<4x128xf32>
    %103 = vector.extract_strided_slice %85 {offsets = [0, 256], sizes = [4, 128], strides = [1, 1]} : vector<4x384xf32> to vector<4x128xf32>
    %104 = vector.extract_strided_slice %86 {offsets = [0, 256], sizes = [4, 128], strides = [1, 1]} : vector<4x384xf32> to vector<4x128xf32>
    %105 = vector.broadcast %50 : vector<1x128xf32> to vector<4x128xf32>
    %106 = arith.addf %104, %105 : vector<4x128xf32>
    %107 = arith.mulf %94, %106 : vector<4x128xf32>
    %108 = arith.addf %103, %107 : vector<4x128xf32>
    %109 = math.tanh %108 : vector<4x128xf32>
    %cst_48 = arith.constant 1.000000e+00 : f32
    %110 = vector.broadcast %cst_48 : f32 to vector<4x128xf32>
    %111 = arith.subf %110, %102 : vector<4x128xf32>
    %112 = arith.mulf %111, %109 : vector<4x128xf32>
    %113 = arith.mulf %102, %82 : vector<4x128xf32>
    %114 = arith.addf %112, %113 : vector<4x128xf32>
    %c4_49 = arith.constant 4 : index
    %c0_50 = arith.constant 0 : index
    %115 = vector.load %arg15[%c4_49, %c0_50] : memref<32x128xf32, #tpu.memory_space<vmem>>, vector<4x128xf32>
    tpu.vector_store %arg15[%c4_49, %c0_50], %114 {strides = array<i32>} : memref<32x128xf32, #tpu.memory_space<vmem>>, vector<4x128xf32>,
    %c2_51 = arith.constant 2 : index
    %c0_52 = arith.constant 0 : index
    %c0_53 = arith.constant 0 : index
    %116 = vector.load %arg14[%c2_51, %c0_52, %c0_53] : memref<8x4x384xf32, #tpu.memory_space<vmem>>, vector<1x4x384xf32>
    %117 = vector.shape_cast %116 : vector<1x4x384xf32> to vector<4x384xf32>
    %cst_54 = arith.constant dense<0.000000e+00> : vector<4x384xf32>
    %118 = tpu.matmul %114, %49, %cst_54 {dimension_numbers = #tpu.dot_dimension_numbers<[1], [0], [0], [1], [0, 0, 1, 1], [], []>} : vector<4x128xf32>, vector<128x384xf32>, vector<4x384xf32> -> vector<4x384xf32>
    %119 = vector.extract_strided_slice %117 {offsets = [0, 0], sizes = [4, 128], strides = [1, 1]} : vector<4x384xf32> to vector<4x128xf32>
    %120 = vector.extract_strided_slice %118 {offsets = [0, 0], sizes = [4, 128], strides = [1, 1]} : vector<4x384xf32> to vector<4x128xf32>
    %121 = arith.addf %119, %120 : vector<4x128xf32>
    %122 = arith.negf %121 : vector<4x128xf32>
    %123 = math.exp %122 : vector<4x128xf32>
    %cst_55 = arith.constant 1.000000e+00 : f32
    %124 = vector.broadcast %cst_55 : f32 to vector<4x128xf32>
    %125 = arith.addf %124, %123 : vector<4x128xf32>
    %126 = arith.divf %124, %125 : vector<4x128xf32>
    %127 = vector.extract_strided_slice %117 {offsets = [0, 128], sizes = [4, 128], strides = [1, 1]} : vector<4x384xf32> to vector<4x128xf32>
    %128 = vector.extract_strided_slice %118 {offsets = [0, 128], sizes = [4, 128], strides = [1, 1]} : vector<4x384xf32> to vector<4x128xf32>
    %129 = arith.addf %127, %128 : vector<4x128xf32>
    %130 = arith.negf %129 : vector<4x128xf32>
    %131 = math.exp %130 : vector<4x128xf32>
    %cst_56 = arith.constant 1.000000e+00 : f32
    %132 = vector.broadcast %cst_56 : f32 to vector<4x128xf32>
    %133 = arith.addf %132, %131 : vector<4x128xf32>
    %134 = arith.divf %132, %133 : vector<4x128xf32>
    %135 = vector.extract_strided_slice %117 {offsets = [0, 256], sizes = [4, 128], strides = [1, 1]} : vector<4x384xf32> to vector<4x128xf32>
    %136 = vector.extract_strided_slice %118 {offsets = [0, 256], sizes = [4, 128], strides = [1, 1]} : vector<4x384xf32> to vector<4x128xf32>
    %137 = vector.broadcast %50 : vector<1x128xf32> to vector<4x128xf32>
    %138 = arith.addf %136, %137 : vector<4x128xf32>
    %139 = arith.mulf %126, %138 : vector<4x128xf32>
    %140 = arith.addf %135, %139 : vector<4x128xf32>
    %141 = math.tanh %140 : vector<4x128xf32>
    %cst_57 = arith.constant 1.000000e+00 : f32
    %142 = vector.broadcast %cst_57 : f32 to vector<4x128xf32>
    %143 = arith.subf %142, %134 : vector<4x128xf32>
    %144 = arith.mulf %143, %141 : vector<4x128xf32>
    %145 = arith.mulf %134, %114 : vector<4x128xf32>
    %146 = arith.addf %144, %145 : vector<4x128xf32>
    %c8 = arith.constant 8 : index
    %c0_58 = arith.constant 0 : index
    %147 = vector.load %arg15[%c8, %c0_58] : memref<32x128xf32, #tpu.memory_space<vmem>>, vector<4x128xf32>
    tpu.vector_store %arg15[%c8, %c0_58], %146 {strides = array<i32>} : memref<32x128xf32, #tpu.memory_space<vmem>>, vector<4x128xf32>,
    %c3_59 = arith.constant 3 : index
    %c0_60 = arith.constant 0 : index
    %c0_61 = arith.constant 0 : index
    %148 = vector.load %arg14[%c3_59, %c0_60, %c0_61] : memref<8x4x384xf32, #tpu.memory_space<vmem>>, vector<1x4x384xf32>
    %149 = vector.shape_cast %148 : vector<1x4x384xf32> to vector<4x384xf32>
    %cst_62 = arith.constant dense<0.000000e+00> : vector<4x384xf32>
    %150 = tpu.matmul %146, %49, %cst_62 {dimension_numbers = #tpu.dot_dimension_numbers<[1], [0], [0], [1], [0, 0, 1, 1], [], []>} : vector<4x128xf32>, vector<128x384xf32>, vector<4x384xf32> -> vector<4x384xf32>
    %151 = vector.extract_strided_slice %149 {offsets = [0, 0], sizes = [4, 128], strides = [1, 1]} : vector<4x384xf32> to vector<4x128xf32>
    %152 = vector.extract_strided_slice %150 {offsets = [0, 0], sizes = [4, 128], strides = [1, 1]} : vector<4x384xf32> to vector<4x128xf32>
    %153 = arith.addf %151, %152 : vector<4x128xf32>
    %154 = arith.negf %153 : vector<4x128xf32>
    %155 = math.exp %154 : vector<4x128xf32>
    %cst_63 = arith.constant 1.000000e+00 : f32
    %156 = vector.broadcast %cst_63 : f32 to vector<4x128xf32>
    %157 = arith.addf %156, %155 : vector<4x128xf32>
    %158 = arith.divf %156, %157 : vector<4x128xf32>
    %159 = vector.extract_strided_slice %149 {offsets = [0, 128], sizes = [4, 128], strides = [1, 1]} : vector<4x384xf32> to vector<4x128xf32>
    %160 = vector.extract_strided_slice %150 {offsets = [0, 128], sizes = [4, 128], strides = [1, 1]} : vector<4x384xf32> to vector<4x128xf32>
    %161 = arith.addf %159, %160 : vector<4x128xf32>
    %162 = arith.negf %161 : vector<4x128xf32>
    %163 = math.exp %162 : vector<4x128xf32>
    %cst_64 = arith.constant 1.000000e+00 : f32
    %164 = vector.broadcast %cst_64 : f32 to vector<4x128xf32>
    %165 = arith.addf %164, %163 : vector<4x128xf32>
    %166 = arith.divf %164, %165 : vector<4x128xf32>
    %167 = vector.extract_strided_slice %149 {offsets = [0, 256], sizes = [4, 128], strides = [1, 1]} : vector<4x384xf32> to vector<4x128xf32>
    %168 = vector.extract_strided_slice %150 {offsets = [0, 256], sizes = [4, 128], strides = [1, 1]} : vector<4x384xf32> to vector<4x128xf32>
    %169 = vector.broadcast %50 : vector<1x128xf32> to vector<4x128xf32>
    %170 = arith.addf %168, %169 : vector<4x128xf32>
    %171 = arith.mulf %158, %170 : vector<4x128xf32>
    %172 = arith.addf %167, %171 : vector<4x128xf32>
    %173 = math.tanh %172 : vector<4x128xf32>
    %cst_65 = arith.constant 1.000000e+00 : f32
    %174 = vector.broadcast %cst_65 : f32 to vector<4x128xf32>
    %175 = arith.subf %174, %166 : vector<4x128xf32>
    %176 = arith.mulf %175, %173 : vector<4x128xf32>
    %177 = arith.mulf %166, %146 : vector<4x128xf32>
    %178 = arith.addf %176, %177 : vector<4x128xf32>
    %c12 = arith.constant 12 : index
    %c0_66 = arith.constant 0 : index
    %179 = vector.load %arg15[%c12, %c0_66] : memref<32x128xf32, #tpu.memory_space<vmem>>, vector<4x128xf32>
    tpu.vector_store %arg15[%c12, %c0_66], %178 {strides = array<i32>} : memref<32x128xf32, #tpu.memory_space<vmem>>, vector<4x128xf32>,
    %c4_67 = arith.constant 4 : index
    %c0_68 = arith.constant 0 : index
    %c0_69 = arith.constant 0 : index
    %180 = vector.load %arg14[%c4_67, %c0_68, %c0_69] : memref<8x4x384xf32, #tpu.memory_space<vmem>>, vector<1x4x384xf32>
    %181 = vector.shape_cast %180 : vector<1x4x384xf32> to vector<4x384xf32>
    %cst_70 = arith.constant dense<0.000000e+00> : vector<4x384xf32>
    %182 = tpu.matmul %178, %49, %cst_70 {dimension_numbers = #tpu.dot_dimension_numbers<[1], [0], [0], [1], [0, 0, 1, 1], [], []>} : vector<4x128xf32>, vector<128x384xf32>, vector<4x384xf32> -> vector<4x384xf32>
    %183 = vector.extract_strided_slice %181 {offsets = [0, 0], sizes = [4, 128], strides = [1, 1]} : vector<4x384xf32> to vector<4x128xf32>
    %184 = vector.extract_strided_slice %182 {offsets = [0, 0], sizes = [4, 128], strides = [1, 1]} : vector<4x384xf32> to vector<4x128xf32>
    %185 = arith.addf %183, %184 : vector<4x128xf32>
    %186 = arith.negf %185 : vector<4x128xf32>
    %187 = math.exp %186 : vector<4x128xf32>
    %cst_71 = arith.constant 1.000000e+00 : f32
    %188 = vector.broadcast %cst_71 : f32 to vector<4x128xf32>
    %189 = arith.addf %188, %187 : vector<4x128xf32>
    %190 = arith.divf %188, %189 : vector<4x128xf32>
    %191 = vector.extract_strided_slice %181 {offsets = [0, 128], sizes = [4, 128], strides = [1, 1]} : vector<4x384xf32> to vector<4x128xf32>
    %192 = vector.extract_strided_slice %182 {offsets = [0, 128], sizes = [4, 128], strides = [1, 1]} : vector<4x384xf32> to vector<4x128xf32>
    %193 = arith.addf %191, %192 : vector<4x128xf32>
    %194 = arith.negf %193 : vector<4x128xf32>
    %195 = math.exp %194 : vector<4x128xf32>
    %cst_72 = arith.constant 1.000000e+00 : f32
    %196 = vector.broadcast %cst_72 : f32 to vector<4x128xf32>
    %197 = arith.addf %196, %195 : vector<4x128xf32>
    %198 = arith.divf %196, %197 : vector<4x128xf32>
    %199 = vector.extract_strided_slice %181 {offsets = [0, 256], sizes = [4, 128], strides = [1, 1]} : vector<4x384xf32> to vector<4x128xf32>
    %200 = vector.extract_strided_slice %182 {offsets = [0, 256], sizes = [4, 128], strides = [1, 1]} : vector<4x384xf32> to vector<4x128xf32>
    %201 = vector.broadcast %50 : vector<1x128xf32> to vector<4x128xf32>
    %202 = arith.addf %200, %201 : vector<4x128xf32>
    %203 = arith.mulf %190, %202 : vector<4x128xf32>
    %204 = arith.addf %199, %203 : vector<4x128xf32>
    %205 = math.tanh %204 : vector<4x128xf32>
    %cst_73 = arith.constant 1.000000e+00 : f32
    %206 = vector.broadcast %cst_73 : f32 to vector<4x128xf32>
    %207 = arith.subf %206, %198 : vector<4x128xf32>
    %208 = arith.mulf %207, %205 : vector<4x128xf32>
    %209 = arith.mulf %198, %178 : vector<4x128xf32>
    %210 = arith.addf %208, %209 : vector<4x128xf32>
    %c16 = arith.constant 16 : index
    %c0_74 = arith.constant 0 : index
    %211 = vector.load %arg15[%c16, %c0_74] : memref<32x128xf32, #tpu.memory_space<vmem>>, vector<4x128xf32>
    tpu.vector_store %arg15[%c16, %c0_74], %210 {strides = array<i32>} : memref<32x128xf32, #tpu.memory_space<vmem>>, vector<4x128xf32>,
    %c5_75 = arith.constant 5 : index
    %c0_76 = arith.constant 0 : index
    %c0_77 = arith.constant 0 : index
    %212 = vector.load %arg14[%c5_75, %c0_76, %c0_77] : memref<8x4x384xf32, #tpu.memory_space<vmem>>, vector<1x4x384xf32>
    %213 = vector.shape_cast %212 : vector<1x4x384xf32> to vector<4x384xf32>
    %cst_78 = arith.constant dense<0.000000e+00> : vector<4x384xf32>
    %214 = tpu.matmul %210, %49, %cst_78 {dimension_numbers = #tpu.dot_dimension_numbers<[1], [0], [0], [1], [0, 0, 1, 1], [], []>} : vector<4x128xf32>, vector<128x384xf32>, vector<4x384xf32> -> vector<4x384xf32>
    %215 = vector.extract_strided_slice %213 {offsets = [0, 0], sizes = [4, 128], strides = [1, 1]} : vector<4x384xf32> to vector<4x128xf32>
    %216 = vector.extract_strided_slice %214 {offsets = [0, 0], sizes = [4, 128], strides = [1, 1]} : vector<4x384xf32> to vector<4x128xf32>
    %217 = arith.addf %215, %216 : vector<4x128xf32>
    %218 = arith.negf %217 : vector<4x128xf32>
    %219 = math.exp %218 : vector<4x128xf32>
    %cst_79 = arith.constant 1.000000e+00 : f32
    %220 = vector.broadcast %cst_79 : f32 to vector<4x128xf32>
    %221 = arith.addf %220, %219 : vector<4x128xf32>
    %222 = arith.divf %220, %221 : vector<4x128xf32>
    %223 = vector.extract_strided_slice %213 {offsets = [0, 128], sizes = [4, 128], strides = [1, 1]} : vector<4x384xf32> to vector<4x128xf32>
    %224 = vector.extract_strided_slice %214 {offsets = [0, 128], sizes = [4, 128], strides = [1, 1]} : vector<4x384xf32> to vector<4x128xf32>
    %225 = arith.addf %223, %224 : vector<4x128xf32>
    %226 = arith.negf %225 : vector<4x128xf32>
    %227 = math.exp %226 : vector<4x128xf32>
    %cst_80 = arith.constant 1.000000e+00 : f32
    %228 = vector.broadcast %cst_80 : f32 to vector<4x128xf32>
    %229 = arith.addf %228, %227 : vector<4x128xf32>
    %230 = arith.divf %228, %229 : vector<4x128xf32>
    %231 = vector.extract_strided_slice %213 {offsets = [0, 256], sizes = [4, 128], strides = [1, 1]} : vector<4x384xf32> to vector<4x128xf32>
    %232 = vector.extract_strided_slice %214 {offsets = [0, 256], sizes = [4, 128], strides = [1, 1]} : vector<4x384xf32> to vector<4x128xf32>
    %233 = vector.broadcast %50 : vector<1x128xf32> to vector<4x128xf32>
    %234 = arith.addf %232, %233 : vector<4x128xf32>
    %235 = arith.mulf %222, %234 : vector<4x128xf32>
    %236 = arith.addf %231, %235 : vector<4x128xf32>
    %237 = math.tanh %236 : vector<4x128xf32>
    %cst_81 = arith.constant 1.000000e+00 : f32
    %238 = vector.broadcast %cst_81 : f32 to vector<4x128xf32>
    %239 = arith.subf %238, %230 : vector<4x128xf32>
    %240 = arith.mulf %239, %237 : vector<4x128xf32>
    %241 = arith.mulf %230, %210 : vector<4x128xf32>
    %242 = arith.addf %240, %241 : vector<4x128xf32>
    %c20 = arith.constant 20 : index
    %c0_82 = arith.constant 0 : index
    %243 = vector.load %arg15[%c20, %c0_82] : memref<32x128xf32, #tpu.memory_space<vmem>>, vector<4x128xf32>
    tpu.vector_store %arg15[%c20, %c0_82], %242 {strides = array<i32>} : memref<32x128xf32, #tpu.memory_space<vmem>>, vector<4x128xf32>,
    %c6_83 = arith.constant 6 : index
    %c0_84 = arith.constant 0 : index
    %c0_85 = arith.constant 0 : index
    %244 = vector.load %arg14[%c6_83, %c0_84, %c0_85] : memref<8x4x384xf32, #tpu.memory_space<vmem>>, vector<1x4x384xf32>
    %245 = vector.shape_cast %244 : vector<1x4x384xf32> to vector<4x384xf32>
    %cst_86 = arith.constant dense<0.000000e+00> : vector<4x384xf32>
    %246 = tpu.matmul %242, %49, %cst_86 {dimension_numbers = #tpu.dot_dimension_numbers<[1], [0], [0], [1], [0, 0, 1, 1], [], []>} : vector<4x128xf32>, vector<128x384xf32>, vector<4x384xf32> -> vector<4x384xf32>
    %247 = vector.extract_strided_slice %245 {offsets = [0, 0], sizes = [4, 128], strides = [1, 1]} : vector<4x384xf32> to vector<4x128xf32>
    %248 = vector.extract_strided_slice %246 {offsets = [0, 0], sizes = [4, 128], strides = [1, 1]} : vector<4x384xf32> to vector<4x128xf32>
    %249 = arith.addf %247, %248 : vector<4x128xf32>
    %250 = arith.negf %249 : vector<4x128xf32>
    %251 = math.exp %250 : vector<4x128xf32>
    %cst_87 = arith.constant 1.000000e+00 : f32
    %252 = vector.broadcast %cst_87 : f32 to vector<4x128xf32>
    %253 = arith.addf %252, %251 : vector<4x128xf32>
    %254 = arith.divf %252, %253 : vector<4x128xf32>
    %255 = vector.extract_strided_slice %245 {offsets = [0, 128], sizes = [4, 128], strides = [1, 1]} : vector<4x384xf32> to vector<4x128xf32>
    %256 = vector.extract_strided_slice %246 {offsets = [0, 128], sizes = [4, 128], strides = [1, 1]} : vector<4x384xf32> to vector<4x128xf32>
    %257 = arith.addf %255, %256 : vector<4x128xf32>
    %258 = arith.negf %257 : vector<4x128xf32>
    %259 = math.exp %258 : vector<4x128xf32>
    %cst_88 = arith.constant 1.000000e+00 : f32
    %260 = vector.broadcast %cst_88 : f32 to vector<4x128xf32>
    %261 = arith.addf %260, %259 : vector<4x128xf32>
    %262 = arith.divf %260, %261 : vector<4x128xf32>
    %263 = vector.extract_strided_slice %245 {offsets = [0, 256], sizes = [4, 128], strides = [1, 1]} : vector<4x384xf32> to vector<4x128xf32>
    %264 = vector.extract_strided_slice %246 {offsets = [0, 256], sizes = [4, 128], strides = [1, 1]} : vector<4x384xf32> to vector<4x128xf32>
    %265 = vector.broadcast %50 : vector<1x128xf32> to vector<4x128xf32>
    %266 = arith.addf %264, %265 : vector<4x128xf32>
    %267 = arith.mulf %254, %266 : vector<4x128xf32>
    %268 = arith.addf %263, %267 : vector<4x128xf32>
    %269 = math.tanh %268 : vector<4x128xf32>
    %cst_89 = arith.constant 1.000000e+00 : f32
    %270 = vector.broadcast %cst_89 : f32 to vector<4x128xf32>
    %271 = arith.subf %270, %262 : vector<4x128xf32>
    %272 = arith.mulf %271, %269 : vector<4x128xf32>
    %273 = arith.mulf %262, %242 : vector<4x128xf32>
    %274 = arith.addf %272, %273 : vector<4x128xf32>
    %c24 = arith.constant 24 : index
    %c0_90 = arith.constant 0 : index
    %275 = vector.load %arg15[%c24, %c0_90] : memref<32x128xf32, #tpu.memory_space<vmem>>, vector<4x128xf32>
    tpu.vector_store %arg15[%c24, %c0_90], %274 {strides = array<i32>} : memref<32x128xf32, #tpu.memory_space<vmem>>, vector<4x128xf32>,
    %c7_91 = arith.constant 7 : index
    %c0_92 = arith.constant 0 : index
    %c0_93 = arith.constant 0 : index
    %276 = vector.load %arg14[%c7_91, %c0_92, %c0_93] : memref<8x4x384xf32, #tpu.memory_space<vmem>>, vector<1x4x384xf32>
    %277 = vector.shape_cast %276 : vector<1x4x384xf32> to vector<4x384xf32>
    %cst_94 = arith.constant dense<0.000000e+00> : vector<4x384xf32>
    %278 = tpu.matmul %274, %49, %cst_94 {dimension_numbers = #tpu.dot_dimension_numbers<[1], [0], [0], [1], [0, 0, 1, 1], [], []>} : vector<4x128xf32>, vector<128x384xf32>, vector<4x384xf32> -> vector<4x384xf32>
    %279 = vector.extract_strided_slice %277 {offsets = [0, 0], sizes = [4, 128], strides = [1, 1]} : vector<4x384xf32> to vector<4x128xf32>
    %280 = vector.extract_strided_slice %278 {offsets = [0, 0], sizes = [4, 128], strides = [1, 1]} : vector<4x384xf32> to vector<4x128xf32>
    %281 = arith.addf %279, %280 : vector<4x128xf32>
    %282 = arith.negf %281 : vector<4x128xf32>
    %283 = math.exp %282 : vector<4x128xf32>
    %cst_95 = arith.constant 1.000000e+00 : f32
    %284 = vector.broadcast %cst_95 : f32 to vector<4x128xf32>
    %285 = arith.addf %284, %283 : vector<4x128xf32>
    %286 = arith.divf %284, %285 : vector<4x128xf32>
    %287 = vector.extract_strided_slice %277 {offsets = [0, 128], sizes = [4, 128], strides = [1, 1]} : vector<4x384xf32> to vector<4x128xf32>
    %288 = vector.extract_strided_slice %278 {offsets = [0, 128], sizes = [4, 128], strides = [1, 1]} : vector<4x384xf32> to vector<4x128xf32>
    %289 = arith.addf %287, %288 : vector<4x128xf32>
    %290 = arith.negf %289 : vector<4x128xf32>
    %291 = math.exp %290 : vector<4x128xf32>
    %cst_96 = arith.constant 1.000000e+00 : f32
    %292 = vector.broadcast %cst_96 : f32 to vector<4x128xf32>
    %293 = arith.addf %292, %291 : vector<4x128xf32>
    %294 = arith.divf %292, %293 : vector<4x128xf32>
    %295 = vector.extract_strided_slice %277 {offsets = [0, 256], sizes = [4, 128], strides = [1, 1]} : vector<4x384xf32> to vector<4x128xf32>
    %296 = vector.extract_strided_slice %278 {offsets = [0, 256], sizes = [4, 128], strides = [1, 1]} : vector<4x384xf32> to vector<4x128xf32>
    %297 = vector.broadcast %50 : vector<1x128xf32> to vector<4x128xf32>
    %298 = arith.addf %296, %297 : vector<4x128xf32>
    %299 = arith.mulf %286, %298 : vector<4x128xf32>
    %300 = arith.addf %295, %299 : vector<4x128xf32>
    %301 = math.tanh %300 : vector<4x128xf32>
    %cst_97 = arith.constant 1.000000e+00 : f32
    %302 = vector.broadcast %cst_97 : f32 to vector<4x128xf32>
    %303 = arith.subf %302, %294 : vector<4x128xf32>
    %304 = arith.mulf %303, %301 : vector<4x128xf32>
    %305 = arith.mulf %294, %274 : vector<4x128xf32>
    %306 = arith.addf %304, %305 : vector<4x128xf32>
    %c28 = arith.constant 28 : index
    %c0_98 = arith.constant 0 : index
    %307 = vector.load %arg15[%c28, %c0_98] : memref<32x128xf32, #tpu.memory_space<vmem>>, vector<4x128xf32>
    tpu.vector_store %arg15[%c28, %c0_98], %306 {strides = array<i32>} : memref<32x128xf32, #tpu.memory_space<vmem>>, vector<4x128xf32>,
    %c0_99 = arith.constant 0 : index
    %c0_100 = arith.constant 0 : index
    %308 = vector.load %arg13[%c0_99, %c0_100] : memref<4x128xf32, #tpu.memory_space<vmem>>, vector<4x128xf32>
    tpu.vector_store %arg13[%c0_99, %c0_100], %306 {strides = array<i32>} : memref<4x128xf32, #tpu.memory_space<vmem>>, vector<4x128xf32>,
    %c0_101 = arith.constant 0 : index
    %c0_102 = arith.constant 0 : index
    %309 = vector.load %arg1[%c0_101, %c0_102] : memref<32x32xf32, #tpu.memory_space<vmem>>, vector<32x32xf32>
    %c0_103 = arith.constant 0 : index
    %c0_104 = arith.constant 0 : index
    %310 = vector.load %arg9[%c0_103, %c0_104] : memref<32x128xf32, #tpu.memory_space<vmem>>, vector<32x128xf32>
    %cst_105 = arith.constant dense<0.000000e+00> : vector<32x128xf32>
    %311 = tpu.matmul %309, %310, %cst_105 {dimension_numbers = #tpu.dot_dimension_numbers<[1], [0], [0], [1], [0, 0, 1, 1], [], []>} : vector<32x32xf32>, vector<32x128xf32>, vector<32x128xf32> -> vector<32x128xf32>
    %c0_106 = arith.constant 0 : index
    %c0_107 = arith.constant 0 : index
    %312 = vector.load %arg15[%c0_106, %c0_107] : memref<32x128xf32, #tpu.memory_space<vmem>>, vector<32x128xf32>
    %c0_108 = arith.constant 0 : index
    %c0_109 = arith.constant 0 : index
    %313 = vector.load %arg10[%c0_108, %c0_109] : memref<128x128xf32, #tpu.memory_space<vmem>>, vector<128x128xf32>
    %cst_110 = arith.constant dense<0.000000e+00> : vector<32x128xf32>
    %314 = tpu.matmul %312, %313, %cst_110 {dimension_numbers = #tpu.dot_dimension_numbers<[1], [0], [0], [1], [0, 0, 1, 1], [], []>} : vector<32x128xf32>, vector<128x128xf32>, vector<32x128xf32> -> vector<32x128xf32>
    %315 = arith.addf %311, %314 : vector<32x128xf32>
    %c0_111 = arith.constant 0 : index
    %c0_112 = arith.constant 0 : index
    %316 = vector.load %arg11[%c0_111, %c0_112] : memref<4x128xf32, #tpu.memory_space<vmem>>, vector<4x128xf32>
    %317 = vector.extract_strided_slice %315 {offsets = [0, 0], sizes = [4, 128], strides = [1, 1]} : vector<32x128xf32> to vector<4x128xf32>
    %318 = arith.addf %317, %316 : vector<4x128xf32>
    %c0_113 = arith.constant 0 : index
    %c0_114 = arith.constant 0 : index
    %c0_115 = arith.constant 0 : index
    %319 = vector.load %arg12[%c0_113, %c0_114, %c0_115] : memref<8x4x128xf32, #tpu.memory_space<vmem>>, vector<1x4x128xf32>
    %320 = vector.shape_cast %319 : vector<1x4x128xf32> to vector<4x128xf32>
    %321 = vector.shape_cast %318 : vector<4x128xf32> to vector<1x4x128xf32>
    tpu.vector_store %arg12[%c0_113, %c0_114, %c0_115], %321 {strides = array<i32>} : memref<8x4x128xf32, #tpu.memory_space<vmem>>, vector<1x4x128xf32>,
    %322 = vector.extract_strided_slice %315 {offsets = [4, 0], sizes = [4, 128], strides = [1, 1]} : vector<32x128xf32> to vector<4x128xf32>
    %323 = arith.addf %322, %316 : vector<4x128xf32>
    %c1_116 = arith.constant 1 : index
    %c0_117 = arith.constant 0 : index
    %c0_118 = arith.constant 0 : index
    %324 = vector.load %arg12[%c1_116, %c0_117, %c0_118] : memref<8x4x128xf32, #tpu.memory_space<vmem>>, vector<1x4x128xf32>
    %325 = vector.shape_cast %324 : vector<1x4x128xf32> to vector<4x128xf32>
    %326 = vector.shape_cast %323 : vector<4x128xf32> to vector<1x4x128xf32>
    tpu.vector_store %arg12[%c1_116, %c0_117, %c0_118], %326 {strides = array<i32>} : memref<8x4x128xf32, #tpu.memory_space<vmem>>, vector<1x4x128xf32>,
    %327 = vector.extract_strided_slice %315 {offsets = [8, 0], sizes = [4, 128], strides = [1, 1]} : vector<32x128xf32> to vector<4x128xf32>
    %328 = arith.addf %327, %316 : vector<4x128xf32>
    %c2_119 = arith.constant 2 : index
    %c0_120 = arith.constant 0 : index
    %c0_121 = arith.constant 0 : index
    %329 = vector.load %arg12[%c2_119, %c0_120, %c0_121] : memref<8x4x128xf32, #tpu.memory_space<vmem>>, vector<1x4x128xf32>
    %330 = vector.shape_cast %329 : vector<1x4x128xf32> to vector<4x128xf32>
    %331 = vector.shape_cast %328 : vector<4x128xf32> to vector<1x4x128xf32>
    tpu.vector_store %arg12[%c2_119, %c0_120, %c0_121], %331 {strides = array<i32>} : memref<8x4x128xf32, #tpu.memory_space<vmem>>, vector<1x4x128xf32>,
    %332 = vector.extract_strided_slice %315 {offsets = [12, 0], sizes = [4, 128], strides = [1, 1]} : vector<32x128xf32> to vector<4x128xf32>
    %333 = arith.addf %332, %316 : vector<4x128xf32>
    %c3_122 = arith.constant 3 : index
    %c0_123 = arith.constant 0 : index
    %c0_124 = arith.constant 0 : index
    %334 = vector.load %arg12[%c3_122, %c0_123, %c0_124] : memref<8x4x128xf32, #tpu.memory_space<vmem>>, vector<1x4x128xf32>
    %335 = vector.shape_cast %334 : vector<1x4x128xf32> to vector<4x128xf32>
    %336 = vector.shape_cast %333 : vector<4x128xf32> to vector<1x4x128xf32>
    tpu.vector_store %arg12[%c3_122, %c0_123, %c0_124], %336 {strides = array<i32>} : memref<8x4x128xf32, #tpu.memory_space<vmem>>, vector<1x4x128xf32>,
    %337 = vector.extract_strided_slice %315 {offsets = [16, 0], sizes = [4, 128], strides = [1, 1]} : vector<32x128xf32> to vector<4x128xf32>
    %338 = arith.addf %337, %316 : vector<4x128xf32>
    %c4_125 = arith.constant 4 : index
    %c0_126 = arith.constant 0 : index
    %c0_127 = arith.constant 0 : index
    %339 = vector.load %arg12[%c4_125, %c0_126, %c0_127] : memref<8x4x128xf32, #tpu.memory_space<vmem>>, vector<1x4x128xf32>
    %340 = vector.shape_cast %339 : vector<1x4x128xf32> to vector<4x128xf32>
    %341 = vector.shape_cast %338 : vector<4x128xf32> to vector<1x4x128xf32>
    tpu.vector_store %arg12[%c4_125, %c0_126, %c0_127], %341 {strides = array<i32>} : memref<8x4x128xf32, #tpu.memory_space<vmem>>, vector<1x4x128xf32>,
    %342 = vector.extract_strided_slice %315 {offsets = [20, 0], sizes = [4, 128], strides = [1, 1]} : vector<32x128xf32> to vector<4x128xf32>
    %343 = arith.addf %342, %316 : vector<4x128xf32>
    %c5_128 = arith.constant 5 : index
    %c0_129 = arith.constant 0 : index
    %c0_130 = arith.constant 0 : index
    %344 = vector.load %arg12[%c5_128, %c0_129, %c0_130] : memref<8x4x128xf32, #tpu.memory_space<vmem>>, vector<1x4x128xf32>
    %345 = vector.shape_cast %344 : vector<1x4x128xf32> to vector<4x128xf32>
    %346 = vector.shape_cast %343 : vector<4x128xf32> to vector<1x4x128xf32>
    tpu.vector_store %arg12[%c5_128, %c0_129, %c0_130], %346 {strides = array<i32>} : memref<8x4x128xf32, #tpu.memory_space<vmem>>, vector<1x4x128xf32>,
    %347 = vector.extract_strided_slice %315 {offsets = [24, 0], sizes = [4, 128], strides = [1, 1]} : vector<32x128xf32> to vector<4x128xf32>
    %348 = arith.addf %347, %316 : vector<4x128xf32>
    %c6_131 = arith.constant 6 : index
    %c0_132 = arith.constant 0 : index
    %c0_133 = arith.constant 0 : index
    %349 = vector.load %arg12[%c6_131, %c0_132, %c0_133] : memref<8x4x128xf32, #tpu.memory_space<vmem>>, vector<1x4x128xf32>
    %350 = vector.shape_cast %349 : vector<1x4x128xf32> to vector<4x128xf32>
    %351 = vector.shape_cast %348 : vector<4x128xf32> to vector<1x4x128xf32>
    tpu.vector_store %arg12[%c6_131, %c0_132, %c0_133], %351 {strides = array<i32>} : memref<8x4x128xf32, #tpu.memory_space<vmem>>, vector<1x4x128xf32>,
    %352 = vector.extract_strided_slice %315 {offsets = [28, 0], sizes = [4, 128], strides = [1, 1]} : vector<32x128xf32> to vector<4x128xf32>
    %353 = arith.addf %352, %316 : vector<4x128xf32>
    %c7_134 = arith.constant 7 : index
    %c0_135 = arith.constant 0 : index
    %c0_136 = arith.constant 0 : index
    %354 = vector.load %arg12[%c7_134, %c0_135, %c0_136] : memref<8x4x128xf32, #tpu.memory_space<vmem>>, vector<1x4x128xf32>
    %355 = vector.shape_cast %354 : vector<1x4x128xf32> to vector<4x128xf32>
    %356 = vector.shape_cast %353 : vector<4x128xf32> to vector<1x4x128xf32>
    tpu.vector_store %arg12[%c7_134, %c0_135, %c0_136], %356 {strides = array<i32>} : memref<8x4x128xf32, #tpu.memory_space<vmem>>, vector<1x4x128xf32>,
    return
  }
  func.func @transform_0(%arg0: i32) -> (i32, i32) {
    %c0_i32 = arith.constant 0 : i32
    %c0_i32_0 = arith.constant 0 : i32
    %c0_i32_1 = arith.constant 0 : i32
    return %c0_i32, %c0_i32_0 : i32, i32
  }
  func.func @transform_1(%arg0: i32) -> (i32, i32) {
    %c0_i32 = arith.constant 0 : i32
    %c0_i32_0 = arith.constant 0 : i32
    %c0_i32_1 = arith.constant 0 : i32
    return %c0_i32, %c0_i32_0 : i32, i32
  }
  func.func @transform_2(%arg0: i32) -> (i32, i32) {
    %c0_i32 = arith.constant 0 : i32
    %c0_i32_0 = arith.constant 0 : i32
    %c0_i32_1 = arith.constant 0 : i32
    return %c0_i32, %c0_i32_0 : i32, i32
  }
  func.func @transform_3(%arg0: i32) -> (i32, i32) {
    %c0_i32 = arith.constant 0 : i32
    %c0_i32_0 = arith.constant 0 : i32
    %c0_i32_1 = arith.constant 0 : i32
    return %c0_i32, %c0_i32_0 : i32, i32
  }
  func.func @transform_4(%arg0: i32) -> (i32, i32) {
    %c0_i32 = arith.constant 0 : i32
    %c0_i32_0 = arith.constant 0 : i32
    %c0_i32_1 = arith.constant 0 : i32
    return %c0_i32, %c0_i32_0 : i32, i32
  }
  func.func @transform_5(%arg0: i32) -> (i32, i32) {
    %c0_i32 = arith.constant 0 : i32
    %c0_i32_0 = arith.constant 0 : i32
    %c0_i32_1 = arith.constant 0 : i32
    return %c0_i32, %c0_i32_0 : i32, i32
  }
  func.func @transform_6(%arg0: i32) -> (i32, i32) {
    %c0_i32 = arith.constant 0 : i32
    %c0_i32_0 = arith.constant 0 : i32
    %c0_i32_1 = arith.constant 0 : i32
    return %c0_i32, %c0_i32_0 : i32, i32
  }
  func.func @transform_7(%arg0: i32) -> (i32, i32) {
    %c0_i32 = arith.constant 0 : i32
    %c0_i32_0 = arith.constant 0 : i32
    %c0_i32_1 = arith.constant 0 : i32
    return %c0_i32, %c0_i32_0 : i32, i32
  }
  func.func @transform_8(%arg0: i32) -> (i32, i32) {
    %c0_i32 = arith.constant 0 : i32
    %c0_i32_0 = arith.constant 0 : i32
    %c0_i32_1 = arith.constant 0 : i32
    return %c0_i32, %c0_i32_0 : i32, i32
  }
  func.func @transform_9(%arg0: i32) -> (i32, i32) {
    %c0_i32 = arith.constant 0 : i32
    %c0_i32_0 = arith.constant 0 : i32
    %c0_i32_1 = arith.constant 0 : i32
    return %c0_i32, %c0_i32_0 : i32, i32
  }
  func.func @transform_10(%arg0: i32) -> (i32, i32) {
    %c0_i32 = arith.constant 0 : i32
    %c0_i32_0 = arith.constant 0 : i32
    %c0_i32_1 = arith.constant 0 : i32
    return %c0_i32, %c0_i32_0 : i32, i32
  }
  func.func @transform_11(%arg0: i32) -> (i32, i32, i32) {
    %c0_i32 = arith.constant 0 : i32
    %c0_i32_0 = arith.constant 0 : i32
    %c0_i32_1 = arith.constant 0 : i32
    %c0_i32_2 = arith.constant 0 : i32
    return %c0_i32, %c0_i32_0, %c0_i32_1 : i32, i32, i32
  }
  func.func @transform_12(%arg0: i32) -> (i32, i32) {
    %c0_i32 = arith.constant 0 : i32
    %c0_i32_0 = arith.constant 0 : i32
    %c0_i32_1 = arith.constant 0 : i32
    return %c0_i32, %c0_i32_0 : i32, i32
  }
}

</mosaic_0001>

<bundles_post_ra>
// kernel: decoder_forward.1
= control target key start
LH: loop header
LB: loop body
LE: loop exit
PB: predicated region body
PF: predicated region fallthrough
CT: control target
= control target key end

     0   :  { %18 = vsyncpa [#allocation5], 0  ;;  %s4412_s0 = inlined_call_operand.vmem [shape: f32[32,32], index: 0, kind: input, shape index: {}]   ;;  %s4413_s1 = inlined_call_operand.vmem [shape: f32[4,64], index: 1, kind: input, shape index: {}]   ;;  %s4414_s2 = inlined_call_operand.vmem [shape: f32[4,128], index: 2, kind: input, shape index: {}]   ;;  %s4415_s3 = inlined_call_operand.vmem [shape: f32[32,384], index: 3, kind: input, shape index: {}]   ;;  %s4416_s4 = inlined_call_operand.vmem [shape: f32[64,384], index: 4, kind: input, shape index: {}]   ;;  %s4417_s5 = inlined_call_operand.vmem [shape: f32[128,384], index: 5, kind: input, shape index: {}]   ;;  %s4418_s6 = inlined_call_operand.vmem [shape: f32[1,384], index: 6, kind: input, shape index: {}]   ;;  %s4419_s7 = inlined_call_operand.hbm [shape: f32[1,128], index: 7, kind: input, shape index: {}]   ;;  %s4420_s8 = inlined_call_operand.hbm [shape: f32[32,128], index: 8, kind: input, shape index: {}]   ;;  %s4421_s9 = inlined_call_operand.hbm [shape: f32[128,128], index: 9, kind: input, shape index: {}]   ;;  %s4422_s10 = inlined_call_operand.vmem [shape: f32[4,128], index: 10, kind: input, shape index: {}]   ;;  %s4423_s11 = inlined_call_operand.hbm [shape: f32[8,4,128], index: 11, kind: output, shape index: {0}]   ;;  %s4424_s12 = inlined_call_operand.vmem [shape: f32[4,128], index: 12, kind: output, shape index: {1}]  }
   0x1   :  { %19 = vsyncpa [#allocation8], 0 }
   0x2   :  { %20 = vsyncpa [#allocation6], 0  ;;  %s3541_s21 = smov [#allocation7]   ;;  %s3447_s25 = scalar_lea.hbm %s4420_s8, 512 }
   0x3   :  { %s50_s22 = sshll.u32 %s3541_s21, 4  ;;  %p3448_p0 = scmp.ne.s32.totalorder %s4420_s8, %s3447_s25  ;;  %s51_s22 = int_to_ptr.vmem [resolvable:$true] %s50_s22 }
   0x4   :  { %p3451_p1 = scmp.lt.u32.totalorder %s3447_s25, %s4420_s8 }
   0x6   :  { %p3453_p2 = pnand %p3451_p1, %p3448_p0 }
   0x8   :  { %3456 = shalt.err (!%p3453_p2)
}
   0x9   :  { %s3457_s30 = scalar_lea.vmem %s51_s22, 512  ;;  %p3462_p4 = scmp.lt.s32.totalorder %s51_s22, %s51_s22 }
   0xa   :  { %p3458_p3 = scmp.ne.s32.totalorder %s51_s22, %s3457_s30  ;;  %p3463_p5 = scmp.lt.s32.totalorder %s3457_s30, %s3457_s30 }
   0xc   :  { %p3464_p6 = por %p3463_p5, %p3462_p4 }
   0xe   :  { %p3465_p7 = pnand %p3464_p6, %p3458_p3 }
  0x10   :  { %3468 = shalt.err (!%p3465_p7)
}
  0x11   :  { %s3542_s13 = smov 128   ;;  %s3543_s14 = smov 8  }
  0x12   :  { %56 = dma.hbm_to_vmem [thread:$0]  %s4420_s8, 512, %s51_s22, [#allocation8], %s3542_s13, %s3542_s13, %s3543_s14  }
  0x13   :  { %s3544_s17 = smov [#allocation4]   ;;  %s3545_s19 = smov [#allocation9]  }
  0x14   :  { %s41_s18 = sshll.u32 %s3544_s17, 4  ;;  %s62_s20 = sshll.u32 %s3545_s19, 4  ;;  %s42_s18 = int_to_ptr.vmem [resolvable:$true] %s41_s18  ;;  %s63_s20 = int_to_ptr.vmem [resolvable:$true] %s62_s20 }
  0x15   :  { %s3469_s24 = scalar_lea.hbm %s4419_s7, 16 }
  0x16   :  { %p3470_p8 = scmp.ne.s32.totalorder %s4419_s7, %s3469_s24  ;;  %p3473_p9 = scmp.lt.u32.totalorder %s3469_s24, %s4419_s7 }
  0x18   :  { %p3475_p10 = pnand %p3473_p9, %p3470_p8 }
  0x1a   :  { %3478 = shalt.err (!%p3475_p10)
}
  0x1b   :  { %s3479_s8 = scalar_lea.vmem %s42_s18, 16  ;;  %s3483_s22 = scalar_lea.vmem %s42_s18, 32 }
  0x1c   :  { %p3480_p11 = scmp.ne.s32.totalorder %s42_s18, %s3479_s8  ;;  %p3484_p12 = scmp.lt.s32.totalorder %s42_s18, %s42_s18 }
  0x1d   :  { %p3485_p13 = scmp.lt.s32.totalorder %s3483_s22, %s3479_s8 }
  0x1f   :  { %p3486_p0 = por %p3485_p13, %p3484_p12 }
  0x21   :  { %p3487_p1 = pnand %p3486_p0, %p3480_p11 }
  0x23   :  { %3490 = shalt.err (!%p3487_p1)
}
  0x24   :  { %44 = dma.hbm_to_vmem [thread:$0]  %s4419_s7, 16, %s42_s18, [#allocation5]  }
  0x25   :  { %s3491_s17 = scalar_lea.hbm %s4421_s9, 2048 }
  0x26   :  { %p3492_p2 = scmp.ne.s32.totalorder %s4421_s9, %s3491_s17  ;;  %p3495_p3 = scmp.lt.u32.totalorder %s3491_s17, %s4421_s9 }
  0x28   :  { %p3497_p4 = pnand %p3495_p3, %p3492_p2 }
  0x2a   :  { %3500 = shalt.err (!%p3497_p4)
}
  0x2b   :  { %s3501_s25 = scalar_lea.vmem %s63_s20, 2048  ;;  %p3506_p6 = scmp.lt.s32.totalorder %s63_s20, %s63_s20 }
  0x2c   :  { %p3502_p5 = scmp.ne.s32.totalorder %s63_s20, %s3501_s25  ;;  %p3507_p7 = scmp.lt.s32.totalorder %s3501_s25, %s3501_s25 }
  0x2e   :  { %p3508_p8 = por %p3507_p7, %p3506_p6 }
  0x30   :  { %p3509_p9 = pnand %p3508_p8, %p3502_p5 }
  0x32   :  { %3512 = shalt.err (!%p3509_p9)
}
  0x33   :  { %68 = dma.hbm_to_vmem [thread:$0]  %s4421_s9, 2048, %s63_s20, [#allocation8], %s3542_s13, %s3542_s13, %s3543_s14  }
  0x34   :  { %3535 = dma.done.wait [#allocation5], 16  }
  0x35   :  { %3536 = vsyncadd [#allocation5], 4294967280 }
  0x36   :  { %3537 = dma.done.wait [#allocation8], 2560  }
  0x37   :  { %3538 = vsyncadd [#allocation8], 4294964736  ;;  %v4425_v0 = vmov 0.0   ;;  %v85_v1 = vld [vmem:[%s4415_s3 + $0x8] sm:$0xff]  ;;  %v88_v2 = vld [vmem:[%s4415_s3 + $0x20] sm:$0xff]  ;;  %vm96_vm0 = vcmask 261120  }
  0x38   :  { %173 = vmatprep.mubr.f32.mxu0 %v4425_v0  ;;  %v86_v3 = vld [vmem:[%s4415_s3 + $0x10] sm:$0xff]  ;;  %v2815_v4 = vpack.c.bf16 %v88_v2, %v85_v1  ;;  %v89_v5 = vld [vmem:[%s4415_s3 + $0x28] sm:$0xff]  ;;  %v84_v6 = vld [vmem:[%s4415_s3] sm:$0xff]  ;;  %vm325_vm1 = vcmask 523264   ;;  %vm3548_vm2 = vmmov 0  }
  0x39   :  { %v87_v7 = vld [vmem:[%s4415_s3 + $0x18] sm:$0xff]  ;;  %v2823_v8 = vpack.c.bf16 %v89_v5, %v86_v3  ;;  %v94_v11 = vld [vmem:[%s4415_s3 + $0x50] sm:$0xff]  ;;  %v92_v12 = vld [vmem:[%s4415_s3 + $0x40] sm:$0xff] }
  0x3a   :  { %v2817_v9 = vpack.c.bf16 %v87_v7, %v84_v6  ;;  %v91_v10 = vld [vmem:[%s4415_s3 + $0x38] sm:$0xff]  ;;  %2816 = vmatprep.subr.bf16.mxu0 %v2815_v4  ;;  %v90_v15 = vld [vmem:[%s4415_s3 + $0x30] sm:$0xff]  ;;  %v93_v16 = vld [vmem:[%s4415_s3 + $0x48] sm:$0xff] }
  0x3b   :  { %v2819_v13 = vpack.c.bf16 %v94_v11, %v91_v10  ;;  %v95_v14 = vld [vmem:[%s4415_s3 + $0x58] sm:$0xff]  ;;  %2824 = vmatprep.subr.bf16.mxu1 %v2823_v8  ;;  %v2821_v18 = vpack.c.bf16 %v93_v16, %v90_v15  ;;  %v80_v19 = vld [vmem:[%s4412_s0] sm:$0xff]  ;;  %v285_v20 = vld [vmem:[%s4416_s4 + $0x8] sm:$0xff] }
  0x3c   :  { %2818 = vmatpush1.bf16.msra.mxu0 %v2817_v9  ;;  %v2827_v17 = vpack.c.bf16 %v95_v14, %v92_v12  ;;  %2826 = vmatpush3.bf16.msra.mxu1 %v2823_v8  ;;  %v288_v21 = vld [vmem:[%s4416_s4 + $0x20] sm:$0xff]  ;;  %v571_v22 = vld [vmem:[%s4417_s5 + $0x8] sm:$0xff]  ;;  %v287_v27 = vld [vmem:[%s4416_s4 + $0x18] sm:$0xff] }
  0x3d   :  { %2820 = vmatprep.subr.bf16.mxu0 %v2819_v13  ;;  %v574_v23 = vld [vmem:[%s4417_s5 + $0x20] sm:$0xff]  ;;  %2458 = vmatprep.mubr.msk.f32.mxu1 %vm96_vm0, %v80_v19  ;;  %v2831_v24 = vpack.c.bf16 %v288_v21, %v285_v20  ;;  %v573_v29 = vld [vmem:[%s4417_s5 + $0x18] sm:$0xff]  ;;  %v294_v31 = vld [vmem:[%s4416_s4 + $0x50] sm:$0xff] }
  0x3e   :  { %2828 = vmatprep.subr.bf16.mxu1 %v2827_v17  ;;  %v3712_v25 = vpack.c.bf16 %v574_v23, %v571_v22  ;;  %v284_v26 = vld [vmem:[%s4416_s4] sm:$0xff]  ;;  %v291_v30 = vld [vmem:[%s4416_s4 + $0x38] sm:$0xff]  ;;  %v580_v34 = vld [vmem:[%s4417_s5 + $0x50] sm:$0xff] }
  0x3f   :  { %v570_v28 = vld [vmem:[%s4417_s5] sm:$0xff]  ;;  %v577_v33 = vld [vmem:[%s4417_s5 + $0x38] sm:$0xff]  ;;  %v81_v35 = vld [vmem:[%s4412_s0 + $0x8] sm:$0xff]  ;;  %v2833_v36 = vpack.c.bf16 %v287_v27, %v284_v26  ;;  %v2835_v40 = vpack.c.bf16 %v294_v31, %v291_v30 }
  0x40   :  { %4431 = vst [vmem:[#allocation14_spill] sm:$0xff] %v3712_v25  ;;  %2822 = vmatpush1.bf16.msra.mxu0 %v2821_v18  ;;  %v3732_v32 = vpack.c.bf16 %v573_v29, %v570_v28  ;;  %2830 = vmatpush3.bf16.msra.mxu1 %v2827_v17  ;;  %v3744_v37 = vpack.c.bf16 %v580_v34, %v577_v33  ;;  %v576_v38 = vld [vmem:[%s4417_s5 + $0x30] sm:$0xff]  ;;  %v579_v39 = vld [vmem:[%s4417_s5 + $0x48] sm:$0xff]  ;;  %v300_v45 = vld [vmem:[%s4416_s4 + $0x80] sm:$0xff] }
  0x41   :  { %2860 = vmatprep.subr.bf16.mxu0 %v3712_v25  ;;  %2832 = vmatprep.subr.bf16.mxu1 %v2831_v24  ;;  %v290_v41 = vld [vmem:[%s4416_s4 + $0x30] sm:$0xff]  ;;  %v293_v42 = vld [vmem:[%s4416_s4 + $0x48] sm:$0xff]  ;;  %v586_v46 = vld [vmem:[%s4417_s5 + $0x80] sm:$0xff]  ;;  %v3773_v47 = vpack.c.bf16 %v579_v39, %v576_v38  ;;  %v4427_v24 = vmov 0.0|0.0  }
  0x42   :  { %v583_v43 = vld [vmem:[%s4417_s5 + $0x68] sm:$0xff]  ;;  %v296_v48 = vld [vmem:[%s4416_s4 + $0x60] sm:$0xff]  ;;  %v82_v49 = vld [vmem:[%s4412_s0 + $0x10] sm:$0xff]  ;;  %v2837_v50 = vpack.c.bf16 %v293_v42, %v290_v41 }
  0x43   :  { %2238 = vmatmul.mubr.msk.f32.vlgmr.msra.gmra.mrb[0].mxu0 %vm96_vm0, %v80_v19  ;;  %v297_v44 = vld [vmem:[%s4416_s4 + $0x68] sm:$0xff]  ;;  %2459 = vmatmul.mubr.msk.f32.vlgmr.msra.gmra.mrb[0].mxu1 %vm96_vm0, %v81_v35  ;;  %v3782_v51 = vpack.c.bf16 %v586_v46, %v583_v43  ;;  %v582_v52 = vld [vmem:[%s4417_s5 + $0x60] sm:$0xff]  ;;  %v585_v53 = vld [vmem:[%s4417_s5 + $0x78] sm:$0xff] }
  0x44   :  { %2862 = vmatpush1.bf16.msra.mxu0 %v3732_v32  ;;  %2834 = vmatpush1.bf16.msra.mxu1 %v2833_v36  ;;  %v83_v54 = vld [vmem:[%s4412_s0 + $0x18] sm:$0xff]  ;;  %v2839_v55 = vpack.c.bf16 %v300_v45, %v297_v44  ;;  %v592_v58 = vld [vmem:[%s4417_s5 + $0xb0] sm:$0xff]  ;;  %v3812_v61 = vpack.c.bf16 %v585_v53, %v582_v52  ;;  %v591_v3 = vld [vmem:[%s4417_s5 + $0xa8] sm:$0xff] }
  0x45   :  { %2864 = vmatprep.subr.bf16.mxu0 %v3744_v37  ;;  %2836 = vmatprep.subr.bf16.mxu1 %v2835_v40  ;;  %v299_v56 = vld [vmem:[%s4416_s4 + $0x78] sm:$0xff]  ;;  %v306_v60 = vld [vmem:[%s4416_s4 + $0xb0] sm:$0xff]  ;;  %v305_v5 = vld [vmem:[%s4416_s4 + $0xa8] sm:$0xff] }
  0x46   :  { %179 = vmatprep.mubr.f32.mxu0 %v4425_v0  ;;  %v589_v57 = vld [vmem:[%s4417_s5 + $0x98] sm:$0xff]  ;;  %2461 = vmatprep.mubr.msk.f32.mxu1 %vm96_vm0, %v82_v49  ;;  %v2841_v62 = vpack.c.bf16 %v299_v56, %v296_v48  ;;  %v302_v1 = vld [vmem:[%s4416_s4 + $0x90] sm:$0xff]  ;;  %v595_v6 = vld [vmem:[%s4417_s5 + $0xc8] sm:$0xff] }
  0x47   :  { %2239 = vmatmul.mubr.msk.f32.gmra.mrb[2].mxu0 %vm96_vm0, %v81_v35  ;;  %v303_v59 = vld [vmem:[%s4416_s4 + $0x98] sm:$0xff]  ;;  %2462 = vmatmul.mubr.msk.f32.gmra.mrb[2].mxu1 %vm96_vm0, %v83_v54  ;;  %v3816_v63 = vpack.c.bf16 %v592_v58, %v589_v57  ;;  %v588_v2 = vld [vmem:[%s4417_s5 + $0x90] sm:$0xff]  ;;  %v598_v7 = vld [vmem:[%s4417_s5 + $0xe0] sm:$0xff]  ;;  %v2845_v9 = vpack.c.bf16 %v305_v5, %v302_v1 }
  0x48   :  { %2866 = vmatpush1.bf16.msra.mxu0 %v3773_v47  ;;  %2838 = vmatpush1.bf16.msra.mxu1 %v2837_v50  ;;  %v2843_v4 = vpack.c.bf16 %v306_v60, %v303_v59  ;;  %v3840_v8 = vpack.c.bf16 %v591_v3, %v588_v2  ;;  %v3844_v10 = vpack.c.bf16 %v598_v7, %v595_v6  ;;  %v286_v11 = vld [vmem:[%s4416_s4 + $0x10] sm:$0xff]  ;;  %v594_v12 = vld [vmem:[%s4417_s5 + $0xc0] sm:$0xff]  ;;  %v597_v13 = vld [vmem:[%s4417_s5 + $0xd8] sm:$0xff] }
  0x49   :  { %2868 = vmatprep.subr.bf16.mxu0 %v3782_v51  ;;  %2840 = vmatprep.subr.bf16.mxu1 %v2839_v55  ;;  %v289_v14 = vld [vmem:[%s4416_s4 + $0x28] sm:$0xff]  ;;  %v601_v15 = vld [vmem:[%s4417_s5 + $0xf8] sm:$0xff]  ;;  %v604_v16 = vld [vmem:[%s4417_s5 + $0x110] sm:$0xff]  ;;  %v3869_v18 = vpack.c.bf16 %v597_v13, %v594_v12 }
  0x4a   :  { %185 = vmatprep.mubr.f32.mxu0 %v4425_v0  ;;  %393 = vmatprep.mubr.f32.mxu1 %v4425_v0  ;;  %v283_v17 = vld [vmem:[%s4413_s1] sm:$0xf]  ;;  %v2848_v19 = vpack.c.bf16 %v289_v14, %v286_v11  ;;  %v3873_v20 = vpack.c.bf16 %v604_v16, %v601_v15  ;;  %v600_v22 = vld [vmem:[%s4417_s5 + $0xf0] sm:$0xff]  ;;  %v603_v23 = vld [vmem:[%s4417_s5 + $0x108] sm:$0xff] }
  0x4b   :  { %2240 = vmatmul.mubr.msk.f32.gmra.mrb[4].mxu0 %vm96_vm0, %v82_v49  ;;  %v292_v21 = vld [vmem:[%s4416_s4 + $0x40] sm:$0xff]  ;;  %v295_v26 = vld [vmem:[%s4416_s4 + $0x58] sm:$0xff]  ;;  %v607_v27 = vld [vmem:[%s4417_s5 + $0x128] sm:$0xff]  ;;  %v3896_v29 = vpack.c.bf16 %v603_v23, %v600_v22  ;;  %v310_v23 = vlaneseq }
  0x4c   :  { %2870 = vmatpush1.bf16.msra.mxu0 %v3812_v61  ;;  %191 = vmatprep.mubr.f32.mxu0 %v4425_v0  ;;  %v610_v28 = vld [vmem:[%s4417_s5 + $0x140] sm:$0xff]  ;;  %v2851_v30 = vpack.c.bf16 %v295_v26, %v292_v21  ;;  %v298_v33 = vld [vmem:[%s4416_s4 + $0x70] sm:$0xff]  ;;  %v609_v35 = vld [vmem:[%s4417_s5 + $0x138] sm:$0xff] }
  0x4d   :  { %2842 = vmatpush1.bf16.msra.mxu1 %v2841_v62  ;;  %2872 = vmatprep.subr.bf16.mxu0 %v3816_v63  ;;  %v3899_v31 = vpack.c.bf16 %v610_v28, %v607_v27  ;;  %v606_v34 = vld [vmem:[%s4417_s5 + $0x120] sm:$0xff]  ;;  %v301_v36 = vld [vmem:[%s4416_s4 + $0x88] sm:$0xff]  ;;  %v613_v38 = vld [vmem:[%s4417_s5 + $0x158] sm:$0xff] }
  0x4e   :  { %2844 = vmatprep.subr.bf16.mxu1 %v2843_v4  ;;  %v616_v39 = vld [vmem:[%s4417_s5 + $0x170] sm:$0xff]  ;;  %v3923_v40 = vpack.c.bf16 %v609_v35, %v606_v34  ;;  %v2854_v41 = vpack.c.bf16 %v301_v36, %v298_v33  ;;  %v615_v44 = vld [vmem:[%s4417_s5 + $0x168] sm:$0xff]  ;;  %v304_v45 = vld [vmem:[%s4416_s4 + $0xa0] sm:$0xff]  ;;  %v311_v33 = vshrl.u32 %v310_v23, 7 }
  0x4f   :  { %2241 = vmatmul.mubr.msk.f32.gmra.mrb[6].mxu0 %vm96_vm0, %v83_v54  ;;  %v3926_v42 = vpack.c.bf16 %v616_v39, %v613_v38  ;;  %v612_v43 = vld [vmem:[%s4417_s5 + $0x150] sm:$0xff]  ;;  %v307_v46 = vld [vmem:[%s4416_s4 + $0xb8] sm:$0xff]  ;;  %v575_v52 = vld [vmem:[%s4417_s5 + $0x28] sm:$0xff] }
  0x50   :  { %2874 = vmatpush1.bf16.msra.mxu0 %v3840_v8  ;;  %686 = vmatprep.mubr.f32.mxu0 %v4425_v0  ;;  %v3942_v48 = vpack.c.bf16 %v615_v44, %v612_v43  ;;  %v2857_v49 = vpack.c.bf16 %v307_v46, %v304_v45  ;;  %v572_v50 = vld [vmem:[%s4417_s5 + $0x10] sm:$0xff]  ;;  %v3956_v53 = vld [vmem:[%s4414_s2] sm:$0xf]  ;;  %v581_v56 = vld [vmem:[%s4417_s5 + $0x58] sm:$0xff]  ;;  %v312_v36 = vsub.s32 0, %v311_v33  ;;  %v316_v39 = vsub.s32 1, %v311_v33 }
  0x51   :  { %2846 = vmatpush1.bf16.msra.mxu1 %v2845_v9  ;;  %2876 = vmatprep.subr.bf16.mxu0 %v3844_v10  ;;  %v3958_v54 = vpack.c.bf16 %v575_v52, %v572_v50  ;;  %v578_v55 = vld [vmem:[%s4417_s5 + $0x40] sm:$0xff]  ;;  %v584_v58 = vld [vmem:[%s4417_s5 + $0x70] sm:$0xff]  ;;  %v587_v59 = vld [vmem:[%s4417_s5 + $0x88] sm:$0xff] }
  0x52   :  { %2847 = vmatprep.subr.bf16.mxu1 %v4427_v24  ;;  %v3972_v57 = vpack.c.bf16 %v581_v56, %v578_v55  ;;  %v3987_v60 = vpack.c.bf16 %v587_v59, %v584_v58  ;;  %v590_v62 = vld [vmem:[%s4417_s5 + $0xa0] sm:$0xff]  ;;  %v593_v1 = vld [vmem:[%s4417_s5 + $0xb8] sm:$0xff]  ;;  %v596_v3 = vld [vmem:[%s4417_s5 + $0xd0] sm:$0xff] }
  0x53   :  { %v3999_v2 = vpack.c.bf16 %v593_v1, %v590_v62  ;;  %v599_v4 = vld [vmem:[%s4417_s5 + $0xe8] sm:$0xff]  ;;  %v602_v6 = vld [vmem:[%s4417_s5 + $0x100] sm:$0xff]  ;;  %v605_v7 = vld [vmem:[%s4417_s5 + $0x118] sm:$0xff] }
  0x54   :  { %2246 = vmatmul.mubr.msk.f32.vlgmr.msra.gmra.mrb[4].mxu1 %vm325_vm1, %v283_v17  ;;  %2878 = vmatpush1.bf16.msra.mxu0 %v3869_v18  ;;  %v4011_v5 = vpack.c.bf16 %v599_v4, %v596_v3  ;;  %v4023_v9 = vpack.c.bf16 %v605_v7, %v602_v6  ;;  %v608_v11 = vld [vmem:[%s4417_s5 + $0x130] sm:$0xff]  ;;  %v611_v12 = vld [vmem:[%s4417_s5 + $0x148] sm:$0xff]  ;;  %v614_v14 = vld [vmem:[%s4417_s5 + $0x160] sm:$0xff] }
  0x55   :  { %2849 = vmatpush3.bf16.msra.mxu1 %v2848_v19  ;;  %2880 = vmatprep.subr.bf16.mxu0 %v3873_v20  ;;  %v4035_v13 = vpack.c.bf16 %v611_v12, %v608_v11  ;;  %v617_v15 = vld [vmem:[%s4417_s5 + $0x178] sm:$0xff]  ;;  %v308_v38 = vld [vmem:[%s4418_s6] sm:$0x7] }
  0x56   :  { %2850 = vmatprep.subr.bf16.mxu1 %v4427_v24  ;;  %2480 = vmatprep.mubr.msk.f32.mxu1 %vm3548_vm2, %v4425_v0  ;;  %v4047_v16 = vpack.c.bf16 %v617_v15, %v614_v14  ;;  %v313_v44 = vrot.slane %v308_v38, %v312_v36  ;;  %v317_v45 = vrot.slane %v308_v38, %v316_v39 }
  0x58   :  { %2882 = vmatpush1.bf16.msra.mxu0 %v3896_v29 }
  0x59   :  { %2852 = vmatpush3.bf16.msra.mxu1 %v2851_v30  ;;  %2884 = vmatprep.subr.bf16.mxu0 %v3899_v31 }
  0x5a   :  { %2853 = vmatprep.subr.bf16.mxu1 %v4427_v24 }
  0x5c   :  { %2886 = vmatpush1.bf16.msra.mxu0 %v3923_v40 }
  0x5d   :  { %2855 = vmatpush3.bf16.msra.mxu1 %v2854_v41  ;;  %2888 = vmatprep.subr.bf16.mxu0 %v3926_v42 }
  0x5e   :  { %2856 = vmatprep.subr.bf16.mxu1 %v4427_v24 }
  0x60   :  { %2890 = vmatpush1.bf16.msra.mxu0 %v3942_v48 }
  0x61   :  { %2858 = vmatpush3.bf16.msra.mxu1 %v2857_v49  ;;  %2916 = vmatprep.subr.bf16.mxu0 %v3712_v25 }
  0x62   :  { %2891 = vmatprep.subr.bf16.mxu1 %v4427_v24 }
  0x63   :  { %687 = vmatmul.mubr.f32.vlgmr.msra.gmra.mrb[8].mxu0 %v3956_v53 }
  0x64   :  { %2481 = vmatmul.mubr.msk.f32.vlgmr.msra.gmra.mrb[6].mxu1 %vm325_vm1, %v283_v17  ;;  %2918 = vmatpush1.bf16.msra.mxu0 %v3732_v32 }
  0x65   :  { %2893 = vmatpush3.bf16.msra.mxu1 %v3958_v54  ;;  %2515 = vmatprep.mubr.msk.f32.mxu1 %vm3548_vm2, %v4425_v0 }
  0x66   :  { %2894 = vmatprep.subr.bf16.mxu1 %v4427_v24  ;;  %2920 = vmatprep.subr.bf16.mxu0 %v3744_v37 }
  0x67   :  { %861 = vmatprep.mubr.f32.mxu0 %v4425_v0 }
  0x68   :  { %2922 = vmatpush1.bf16.msra.mxu0 %v3773_v47 }
  0x69   :  { %2896 = vmatpush3.bf16.msra.mxu1 %v3972_v57  ;;  %2924 = vmatprep.subr.bf16.mxu0 %v3782_v51 }
  0x6a   :  { %2897 = vmatprep.subr.bf16.mxu1 %v4427_v24 }
  0x6c   :  { %2926 = vmatpush1.bf16.msra.mxu0 %v3812_v61 }
  0x6d   :  { %2899 = vmatpush3.bf16.msra.mxu1 %v3987_v60  ;;  %2928 = vmatprep.subr.bf16.mxu0 %v3816_v63 }
  0x6e   :  { %2900 = vmatprep.subr.bf16.mxu1 %v4427_v24 }
  0x70   :  { %2930 = vmatpush1.bf16.msra.mxu0 %v3840_v8 }
  0x71   :  { %2902 = vmatpush3.bf16.msra.mxu1 %v3999_v2  ;;  %2932 = vmatprep.subr.bf16.mxu0 %v3844_v10 }
  0x72   :  { %2903 = vmatprep.subr.bf16.mxu1 %v4427_v24 }
  0x74   :  { %2934 = vmatpush1.bf16.msra.mxu0 %v3869_v18 }
  0x75   :  { %2905 = vmatpush3.bf16.msra.mxu1 %v4011_v5  ;;  %2936 = vmatprep.subr.bf16.mxu0 %v3873_v20 }
  0x76   :  { %2906 = vmatprep.subr.bf16.mxu1 %v4427_v24 }
  0x78   :  { %2938 = vmatpush1.bf16.msra.mxu0 %v3896_v29 }
  0x79   :  { %2908 = vmatpush3.bf16.msra.mxu1 %v4023_v9  ;;  %2940 = vmatprep.subr.bf16.mxu0 %v3899_v31 }
  0x7a   :  { %2909 = vmatprep.subr.bf16.mxu1 %v4427_v24 }
  0x7c   :  { %2942 = vmatpush1.bf16.msra.mxu0 %v3923_v40 }
  0x7d   :  { %2911 = vmatpush3.bf16.msra.mxu1 %v4035_v13  ;;  %2944 = vmatprep.subr.bf16.mxu0 %v3926_v42 }
  0x7e   :  { %2912 = vmatprep.subr.bf16.mxu1 %v4427_v24 }
  0x80   :  { %2946 = vmatpush1.bf16.msra.mxu0 %v3942_v48 }
  0x81   :  { %2914 = vmatpush3.bf16.msra.mxu1 %v4047_v16  ;;  %2972 = vmatprep.subr.bf16.mxu0 %v3712_v25 }
  0x82   :  { %2947 = vmatprep.subr.bf16.mxu1 %v4427_v24 }
  0x84   :  { %2516 = vmatmul.mubr.f32.vlgmr.msra.gmra.mrb[8].mxu1 %v3956_v53 }
  0x85   :  { %2949 = vmatpush3.bf16.msra.mxu1 %v3958_v54  ;;  %2550 = vmatprep.mubr.msk.f32.mxu1 %vm3548_vm2, %v4425_v0 }
  0x86   :  { %2950 = vmatprep.subr.bf16.mxu1 %v4427_v24 }
  0x89   :  { %2952 = vmatpush3.bf16.msra.mxu1 %v3972_v57 }
  0x8a   :  { %2953 = vmatprep.subr.bf16.mxu1 %v4427_v24 }
  0x8d   :  { %2955 = vmatpush3.bf16.msra.mxu1 %v3987_v60 }
  0x8e   :  { %2956 = vmatprep.subr.bf16.mxu1 %v4427_v24 }
  0x91   :  { %2958 = vmatpush3.bf16.msra.mxu1 %v3999_v2 }
  0x92   :  { %2959 = vmatprep.subr.bf16.mxu1 %v4427_v24 }
  0x95   :  { %2961 = vmatpush3.bf16.msra.mxu1 %v4011_v5 }
  0x96   :  { %2962 = vmatprep.subr.bf16.mxu1 %v4427_v24 }
  0x99   :  { %2964 = vmatpush3.bf16.msra.mxu1 %v4023_v9 }
  0x9a   :  { %2965 = vmatprep.subr.bf16.mxu1 %v4427_v24 }
  0x9d   :  { %2967 = vmatpush3.bf16.msra.mxu1 %v4035_v13 }
  0x9e   :  { %2968 = vmatprep.subr.bf16.mxu1 %v4427_v24 }
  0xa1   :  { %2970 = vmatpush3.bf16.msra.mxu1 %v4047_v16 }
  0xa2   :  { %3003 = vmatprep.subr.bf16.mxu1 %v4427_v24  ;;  %v320_v24 = vsub.s32 2, %v311_v33 }
 0x116   :  { %v175_v17 = vpop.f32.mrb[0].mxu0  ;;  %v4074_v19 = vpop.f32.mrb[0].mxu1 }
 0x117   :  { %v177_v21 = vpop.f32.mrb[1].mxu0  ;;  %v4076_v22 = vpop.f32.mrb[1].mxu1 }
 0x11a   :  { %v181_v26 = vpop.f32.mrb[2].mxu0  ;;  %v4078_v27 = vpop.f32.mrb[2].mxu1 }
 0x11b   :  { %v183_v28 = vpop.f32.mrb[3].mxu0  ;;  %v4080_v30 = vpop.f32.mrb[3].mxu1 }
 0x11e   :  { %v187_v34 = vpop.f32.mrb[4].mxu0 }
 0x11f   :  { %v189_v35 = vpop.f32.mrb[5].mxu0 }
 0x122   :  { %v193_v41 = vpop.f32.mrb[6].mxu0 }
 0x123   :  { %v195_v43 = vpop.f32.mrb[7].mxu0 }
 0x127   :  { %v395_v46 = vpop.f32.mrb[4].mxu1 }
 0x128   :  { %v396_v49 = vadd.f32 %v395_v46, %v313_v44  ;;  %v397_v50 = vpop.f32.mrb[5].mxu1 }
 0x129   :  { %v398_v52 = vadd.f32 %v397_v50, %v317_v45 }
 0x12a   :  { %v470_v55 = vadd.f32 %v396_v49, %v175_v17  ;;  %v501_v56 = vadd.f32 %v396_v49, %v181_v26  ;;  %v524_v58 = vadd.f32 %v396_v49, %v187_v34  ;;  %v482_v59 = vrot.slane %v396_v49, 4 }
 0x12b   :  { %v471_v62 = vadd.f32 %v398_v52, %v177_v21  ;;  %v502_v1 = vadd.f32 %v398_v52, %v183_v28  ;;  %v525_v3 = vadd.f32 %v398_v52, %v189_v35  ;;  %v547_v4 = vadd.f32 %v396_v49, %v193_v41 }
 0x12c   :  { %v488_v6 = vadd.f32 %v482_v59, %v175_v17  ;;  %v511_v7 = vadd.f32 %v482_v59, %v181_v26  ;;  %v534_v11 = vadd.f32 %v482_v59, %v187_v34  ;;  %v557_v12 = vadd.f32 %v482_v59, %v193_v41 }
 0x12d   :  { %v475_v14 = vcombine.low %v470_v55, %v471_v62  ;;  %v4085_v15 = vcombine.low %v501_v56, %v502_v1  ;;  %v4087_v23 = vcombine.low %v524_v58, %v525_v3  ;;  %v483_v36 = vrot.slane %v398_v52, 4 }
 0x12e   :  { %v548_v39 = vadd.f32 %v398_v52, %v195_v43  ;;  %v321_v41 = vrot.slane %v308_v38, %v320_v24 }
 0x12f   :  { %v489_v44 = vadd.f32 %v483_v36, %v177_v21  ;;  %v512_v45 = vadd.f32 %v483_v36, %v183_v28  ;;  %v535_v46 = vadd.f32 %v483_v36, %v189_v35  ;;  %v558_v50 = vadd.f32 %v483_v36, %v195_v43 }
 0x130   :  { %v4089_v0 = vcombine.low %v547_v4, %v548_v39  ;;  %v771_v55 = vrot.slane %v475_v14, 4 }
 0x131   :  { %v4091_v25 = vcombine.high %v488_v6, %v489_v44  ;;  %v4093_v17 = vcombine.high %v511_v7, %v512_v45  ;;  %v4095_v26 = vcombine.high %v534_v11, %v535_v46  ;;  %v563_v34 = vcombine.high %v557_v12, %v558_v50  ;;  %v4105_v44 = vld [vmem:[#allocation4] ss:$0 sm:$0xff] }
 0x133   :  { %568 = vst [vmem:[#allocation2 + $0x54] sm:$0xff] %v563_v34 }
 0x136   :  { %v688_v49 = vpop.f32.mrb[8].mxu0 }
 0x137   :  { %v466_v56 = vpop.f32.mrb[6].mxu1  ;;  %v763_v52 = vadd.f32 %v688_v49, %v475_v14  ;;  %v690_v21 = vpop.f32.mrb[9].mxu0 }
 0x138   :  { %v467_v28 = vadd.f32 %v466_v56, %v321_v41  ;;  %v2482_v35 = vpop.f32.mrb[7].mxu1  ;;  %v773_v43 = vadd.f32 %v771_v55, %v690_v21 }
 0x139   :  { %v2248_v58 = vmul.f32 -1.442695, %v763_v52 }
 0x13a   :  { %v472_v33 = vadd.f32 %v467_v28, %v4076_v22  ;;  %v484_v59 = vrot.slane %v467_v28, 4  ;;  %v503_v62 = vadd.f32 %v4074_v19, %v467_v28  ;;  %v526_v1 = vadd.f32 %v467_v28, %v4080_v30 }
 0x13b   :  { %v549_v3 = vadd.f32 %v4078_v27, %v467_v28  ;;  %3366 = vpow2.f32 %v2248_v58  ;;  %v2249_v36 = vmul.f32 -1.442695, %v773_v43  ;;  %v4432_v43 = vmov 0.0|0.0  }
 0x13c   :  { %478 = vst [vmem:[#allocation2 + $0x8] sm:$0xf] %v472_v33  ;;  %v490_v24 = vadd.f32 %v484_v59, %v4076_v22  ;;  %510 = vst [vmem:[#allocation2 + $0x20] sm:$0xf] %v503_v62  ;;  %v513_v38 = vadd.f32 %v4074_v19, %v484_v59  ;;  %v536_v4 = vadd.f32 %v484_v59, %v4080_v30  ;;  %v4433_v58 = vmov 0.0  }
 0x13d   :  { %533 = vst [vmem:[#allocation2 + $0x38] sm:$0xf] %v526_v1  ;;  %v559_v6 = vadd.f32 %v4078_v27, %v484_v59  ;;  %556 = vst [vmem:[#allocation2 + $0x50] sm:$0xf] %v549_v3  ;;  %3368 = vpow2.f32 %v2249_v36 }
 0x13e   :  { %v495_v7 = vcombine.high %v490_v24, %v490_v24  ;;  %v518_v11 = vcombine.high %v513_v38, %v513_v38  ;;  %v541_v12 = vcombine.high %v536_v4, %v536_v4  ;;  %v946_v24 = vrot.slane %v4091_v25, 4 }
 0x13f   :  { %v564_v14 = vcombine.high %v559_v6, %v559_v6 }
 0x140   :  { %500 = vst [vmem:[#allocation2 + $0x14] sm:$0xf] %v495_v7  ;;  %523 = vst [vmem:[#allocation2 + $0x2c] sm:$0xf] %v518_v11 }
 0x141   :  { %546 = vst [vmem:[#allocation2 + $0x44] sm:$0xf] %v541_v12  ;;  %569 = vst [vmem:[#allocation2 + $0x5c] sm:$0xf] %v564_v14 }
 0x143   :  { %v621_v41 = vld [vmem:[#allocation2 + $0x8] sm:$0xf] }
 0x145   :  { %v3367_v22 = vpop.eup %3366 }
 0x146   :  { %v767_v39 = vadd.f32 1.0, %v3367_v22 }
 0x147   :  { %v3369_v19 = vpop.eup %3368 }
 0x148   :  { %3370 = vrcp.f32 %v767_v39  ;;  %v777_v30 = vadd.f32 1.0, %v3369_v19  ;;  %v796_v19 = vld [vmem:[#allocation2 + $0x14] sm:$0xf] }
 0x14a   :  { %3372 = vrcp.f32 %v777_v30 }
 0x152   :  { %v3371_v50 = vpop.eup %3370 }
 0x154   :  { %v3373_v55 = vpop.eup %3372 }
 0x155   :  { %v790_v56 = vsub.f32 1.0, %v3373_v55  ;;  %v792_v28 = vmul.f32 %v3373_v55, %v3956_v53  ;;  %v4434_v53 = vld [vmem:[#allocation14_spill] sm:$0xff] }
 0x157   :  { %v759_v27 = vpop.f32.mrb[8].mxu1 }
 0x158   :  { %v786_v45 = vadd.f32 %v4105_v44, %v759_v27  ;;  %v2517_v46 = vpop.f32.mrb[9].mxu1 }
 0x15a   :  { %v787_v34 = vmul.f32 %v3371_v50, %v786_v45 }
 0x15c   :  { %v788_v49 = vadd.f32 %v787_v34, %v621_v41 }
 0x15e   :  { %3374 = vtanh.f32 %v788_v49 }
 0x168   :  { %v3375_v52 = vpop.eup %3374 }
 0x169   :  { %v791_v21 = vmul.f32 %v3375_v52, %v790_v56 }
 0x16b   :  { %v4109_v35 = vadd.f32 %v792_v28, %v791_v21  ;;  %v1115_v21 = vrot.slane %v4085_v15, 4 }
 0x16d   :  { %794 = vst [vmem:[#allocation3] sm:$0xf] %v4109_v35  ;;  %862 = vmatmul.mubr.f32.vlgmr.msra.gmra.mrb[10].mxu0 %v4109_v35  ;;  %2551 = vmatmul.mubr.f32.vlgmr.msra.gmra.mrb[10].mxu1 %v4109_v35 }
 0x16e   :  { %2974 = vmatpush1.bf16.msra.mxu0 %v3732_v32  ;;  %3005 = vmatpush3.bf16.msra.mxu1 %v3958_v54 }
 0x16f   :  { %2976 = vmatprep.subr.bf16.mxu0 %v3744_v37  ;;  %3006 = vmatprep.subr.bf16.mxu1 %v4432_v43 }
 0x170   :  { %1030 = vmatprep.mubr.f32.mxu0 %v4433_v58  ;;  %2585 = vmatprep.mubr.msk.f32.mxu1 %vm3548_vm2, %v4433_v58 }
 0x172   :  { %2978 = vmatpush1.bf16.msra.mxu0 %v3773_v47  ;;  %3008 = vmatpush3.bf16.msra.mxu1 %v3972_v57 }
 0x173   :  { %2980 = vmatprep.subr.bf16.mxu0 %v3782_v51  ;;  %3009 = vmatprep.subr.bf16.mxu1 %v4432_v43 }
 0x176   :  { %2982 = vmatpush1.bf16.msra.mxu0 %v3812_v61  ;;  %3011 = vmatpush3.bf16.msra.mxu1 %v3987_v60 }
 0x177   :  { %2984 = vmatprep.subr.bf16.mxu0 %v3816_v63  ;;  %3012 = vmatprep.subr.bf16.mxu1 %v4432_v43 }
 0x17a   :  { %2986 = vmatpush1.bf16.msra.mxu0 %v3840_v8  ;;  %3014 = vmatpush3.bf16.msra.mxu1 %v3999_v2 }
 0x17b   :  { %2988 = vmatprep.subr.bf16.mxu0 %v3844_v10  ;;  %3015 = vmatprep.subr.bf16.mxu1 %v4432_v43 }
 0x17e   :  { %2990 = vmatpush1.bf16.msra.mxu0 %v3869_v18  ;;  %3017 = vmatpush3.bf16.msra.mxu1 %v4011_v5 }
 0x17f   :  { %2992 = vmatprep.subr.bf16.mxu0 %v3873_v20  ;;  %3018 = vmatprep.subr.bf16.mxu1 %v4432_v43 }
 0x182   :  { %2994 = vmatpush1.bf16.msra.mxu0 %v3896_v29  ;;  %3020 = vmatpush3.bf16.msra.mxu1 %v4023_v9 }
 0x183   :  { %2996 = vmatprep.subr.bf16.mxu0 %v3899_v31  ;;  %3021 = vmatprep.subr.bf16.mxu1 %v4432_v43 }
 0x186   :  { %2998 = vmatpush1.bf16.msra.mxu0 %v3923_v40  ;;  %3023 = vmatpush3.bf16.msra.mxu1 %v4035_v13 }
 0x187   :  { %3000 = vmatprep.subr.bf16.mxu0 %v3926_v42  ;;  %3024 = vmatprep.subr.bf16.mxu1 %v4432_v43 }
 0x18a   :  { %3002 = vmatpush1.bf16.msra.mxu0 %v3942_v48  ;;  %3026 = vmatpush3.bf16.msra.mxu1 %v4047_v16 }
 0x18b   :  { %3028 = vmatprep.subr.bf16.mxu0 %v4434_v53  ;;  %3059 = vmatprep.subr.bf16.mxu1 %v4432_v43 }
 0x240   :  { %v863_v33 = vpop.f32.mrb[10].mxu0  ;;  %v934_v59 = vpop.f32.mrb[10].mxu1 }
 0x241   :  { %v938_v62 = vadd.f32 %v863_v33, %v4091_v25  ;;  %v865_v1 = vpop.f32.mrb[11].mxu0  ;;  %v2552_v3 = vpop.f32.mrb[11].mxu1  ;;  %v955_v36 = vadd.f32 %v4105_v44, %v934_v59 }
 0x242   :  { %v948_v4 = vadd.f32 %v946_v24, %v865_v1 }
 0x243   :  { %v2251_v38 = vmul.f32 -1.442695, %v938_v62 }
 0x244   :  { %v2252_v6 = vmul.f32 -1.442695, %v948_v4 }
 0x245   :  { %3376 = vpow2.f32 %v2251_v38 }
 0x246   :  { %3378 = vpow2.f32 %v2252_v6  ;;  %v965_v6 = vld [vmem:[#allocation2 + $0x20] sm:$0xf] }
 0x24f   :  { %v3377_v7 = vpop.eup %3376 }
 0x250   :  { %v942_v11 = vadd.f32 1.0, %v3377_v7  ;;  %v3379_v12 = vpop.eup %3378 }
 0x251   :  { %v952_v14 = vadd.f32 1.0, %v3379_v12 }
 0x252   :  { %3380 = vrcp.f32 %v942_v11 }
 0x253   :  { %3382 = vrcp.f32 %v952_v14 }
 0x25c   :  { %v3381_v22 = vpop.eup %3380 }
 0x25d   :  { %v956_v39 = vmul.f32 %v3381_v22, %v955_v36  ;;  %v3383_v27 = vpop.eup %3382 }
 0x25e   :  { %v959_v25 = vsub.f32 1.0, %v3383_v27  ;;  %v961_v50 = vmul.f32 %v3383_v27, %v4109_v35 }
 0x25f   :  { %v957_v30 = vadd.f32 %v956_v39, %v796_v19 }
 0x261   :  { %3384 = vtanh.f32 %v957_v30 }
 0x26b   :  { %v3385_v45 = vpop.eup %3384 }
 0x26c   :  { %v960_v46 = vmul.f32 %v3385_v45, %v959_v25  ;;  %v1284_v45 = vrot.slane %v4093_v17, 4 }
 0x26e   :  { %v4153_v34 = vadd.f32 %v961_v50, %v960_v46 }
 0x270   :  { %963 = vst [vmem:[#allocation3 + $0x4] sm:$0xf] %v4153_v34  ;;  %1031 = vmatmul.mubr.f32.vlgmr.msra.gmra.mrb[12].mxu0 %v4153_v34  ;;  %2586 = vmatmul.mubr.f32.vlgmr.msra.gmra.mrb[12].mxu1 %v4153_v34 }
 0x271   :  { %3030 = vmatpush1.bf16.msra.mxu0 %v3732_v32  ;;  %3061 = vmatpush3.bf16.msra.mxu1 %v3958_v54 }
 0x272   :  { %3032 = vmatprep.subr.bf16.mxu0 %v3744_v37  ;;  %3062 = vmatprep.subr.bf16.mxu1 %v4432_v43 }
 0x273   :  { %1199 = vmatprep.mubr.f32.mxu0 %v4433_v58  ;;  %2620 = vmatprep.mubr.msk.f32.mxu1 %vm3548_vm2, %v4433_v58 }
 0x275   :  { %3034 = vmatpush1.bf16.msra.mxu0 %v3773_v47  ;;  %3064 = vmatpush3.bf16.msra.mxu1 %v3972_v57 }
 0x276   :  { %3036 = vmatprep.subr.bf16.mxu0 %v3782_v51  ;;  %3065 = vmatprep.subr.bf16.mxu1 %v4432_v43 }
 0x279   :  { %3038 = vmatpush1.bf16.msra.mxu0 %v3812_v61  ;;  %3067 = vmatpush3.bf16.msra.mxu1 %v3987_v60 }
 0x27a   :  { %3040 = vmatprep.subr.bf16.mxu0 %v3816_v63  ;;  %3068 = vmatprep.subr.bf16.mxu1 %v4432_v43 }
 0x27d   :  { %3042 = vmatpush1.bf16.msra.mxu0 %v3840_v8  ;;  %3070 = vmatpush3.bf16.msra.mxu1 %v3999_v2 }
 0x27e   :  { %3044 = vmatprep.subr.bf16.mxu0 %v3844_v10  ;;  %3071 = vmatprep.subr.bf16.mxu1 %v4432_v43 }
 0x281   :  { %3046 = vmatpush1.bf16.msra.mxu0 %v3869_v18  ;;  %3073 = vmatpush3.bf16.msra.mxu1 %v4011_v5 }
 0x282   :  { %3048 = vmatprep.subr.bf16.mxu0 %v3873_v20  ;;  %3074 = vmatprep.subr.bf16.mxu1 %v4432_v43 }
 0x285   :  { %3050 = vmatpush1.bf16.msra.mxu0 %v3896_v29  ;;  %3076 = vmatpush3.bf16.msra.mxu1 %v4023_v9 }
 0x286   :  { %3052 = vmatprep.subr.bf16.mxu0 %v3899_v31  ;;  %3077 = vmatprep.subr.bf16.mxu1 %v4432_v43 }
 0x289   :  { %3054 = vmatpush1.bf16.msra.mxu0 %v3923_v40  ;;  %3079 = vmatpush3.bf16.msra.mxu1 %v4035_v13 }
 0x28a   :  { %3056 = vmatprep.subr.bf16.mxu0 %v3926_v42  ;;  %3080 = vmatprep.subr.bf16.mxu1 %v4432_v43 }
 0x28d   :  { %3058 = vmatpush1.bf16.msra.mxu0 %v3942_v48  ;;  %3082 = vmatpush3.bf16.msra.mxu1 %v4047_v16 }
 0x28e   :  { %3084 = vmatprep.subr.bf16.mxu0 %v4434_v53  ;;  %3115 = vmatprep.subr.bf16.mxu1 %v4432_v43 }
 0x343   :  { %v1032_v41 = vpop.f32.mrb[12].mxu0  ;;  %v1103_v49 = vpop.f32.mrb[12].mxu1 }
 0x344   :  { %v1107_v55 = vadd.f32 %v1032_v41, %v4085_v15  ;;  %v1034_v56 = vpop.f32.mrb[13].mxu0  ;;  %v2587_v52 = vpop.f32.mrb[13].mxu1  ;;  %v1124_v24 = vadd.f32 %v4105_v44, %v1103_v49 }
 0x345   :  { %v1117_v35 = vadd.f32 %v1115_v21, %v1034_v56 }
 0x346   :  { %v2253_v28 = vmul.f32 -1.442695, %v1107_v55 }
 0x347   :  { %v2254_v33 = vmul.f32 -1.442695, %v1117_v35  ;;  %v1134_v35 = vld [vmem:[#allocation2 + $0x2c] sm:$0xf] }
 0x348   :  { %3386 = vpow2.f32 %v2253_v28 }
 0x349   :  { %3388 = vpow2.f32 %v2254_v33 }
 0x352   :  { %v3387_v59 = vpop.eup %3386 }
 0x353   :  { %v1111_v62 = vadd.f32 1.0, %v3387_v59  ;;  %v3389_v1 = vpop.eup %3388 }
 0x354   :  { %v1121_v3 = vadd.f32 1.0, %v3389_v1 }
 0x355   :  { %3390 = vrcp.f32 %v1111_v62 }
 0x356   :  { %3392 = vrcp.f32 %v1121_v3 }
 0x35f   :  { %v3391_v38 = vpop.eup %3390 }
 0x360   :  { %v1125_v4 = vmul.f32 %v3391_v38, %v1124_v24  ;;  %v3393_v11 = vpop.eup %3392 }
 0x361   :  { %v1128_v15 = vsub.f32 1.0, %v3393_v11  ;;  %v1130_v36 = vmul.f32 %v3393_v11, %v4153_v34 }
 0x362   :  { %v1126_v7 = vadd.f32 %v1125_v4, %v965_v6 }
 0x364   :  { %3394 = vtanh.f32 %v1126_v7 }
 0x36e   :  { %v3395_v12 = vpop.eup %3394 }
 0x36f   :  { %v1129_v14 = vmul.f32 %v3395_v12, %v1128_v15  ;;  %v1453_v15 = vrot.slane %v4087_v23, 4 }
 0x371   :  { %v4197_v22 = vadd.f32 %v1130_v36, %v1129_v14 }
 0x373   :  { %1132 = vst [vmem:[#allocation3 + $0x8] sm:$0xf] %v4197_v22  ;;  %1200 = vmatmul.mubr.f32.vlgmr.msra.gmra.mrb[14].mxu0 %v4197_v22  ;;  %2621 = vmatmul.mubr.f32.vlgmr.msra.gmra.mrb[14].mxu1 %v4197_v22 }
 0x374   :  { %3086 = vmatpush1.bf16.msra.mxu0 %v3732_v32  ;;  %3117 = vmatpush3.bf16.msra.mxu1 %v3958_v54 }
 0x375   :  { %3088 = vmatprep.subr.bf16.mxu0 %v3744_v37  ;;  %3118 = vmatprep.subr.bf16.mxu1 %v4432_v43 }
 0x376   :  { %1368 = vmatprep.mubr.f32.mxu0 %v4433_v58  ;;  %2655 = vmatprep.mubr.msk.f32.mxu1 %vm3548_vm2, %v4433_v58 }
 0x378   :  { %3090 = vmatpush1.bf16.msra.mxu0 %v3773_v47  ;;  %3120 = vmatpush3.bf16.msra.mxu1 %v3972_v57 }
 0x379   :  { %3092 = vmatprep.subr.bf16.mxu0 %v3782_v51  ;;  %3121 = vmatprep.subr.bf16.mxu1 %v4432_v43 }
 0x37c   :  { %3094 = vmatpush1.bf16.msra.mxu0 %v3812_v61  ;;  %3123 = vmatpush3.bf16.msra.mxu1 %v3987_v60 }
 0x37d   :  { %3096 = vmatprep.subr.bf16.mxu0 %v3816_v63  ;;  %3124 = vmatprep.subr.bf16.mxu1 %v4432_v43 }
 0x380   :  { %3098 = vmatpush1.bf16.msra.mxu0 %v3840_v8  ;;  %3126 = vmatpush3.bf16.msra.mxu1 %v3999_v2 }
 0x381   :  { %3100 = vmatprep.subr.bf16.mxu0 %v3844_v10  ;;  %3127 = vmatprep.subr.bf16.mxu1 %v4432_v43 }
 0x384   :  { %3102 = vmatpush1.bf16.msra.mxu0 %v3869_v18  ;;  %3129 = vmatpush3.bf16.msra.mxu1 %v4011_v5 }
 0x385   :  { %3104 = vmatprep.subr.bf16.mxu0 %v3873_v20  ;;  %3130 = vmatprep.subr.bf16.mxu1 %v4432_v43 }
 0x388   :  { %3106 = vmatpush1.bf16.msra.mxu0 %v3896_v29  ;;  %3132 = vmatpush3.bf16.msra.mxu1 %v4023_v9 }
 0x389   :  { %3108 = vmatprep.subr.bf16.mxu0 %v3899_v31  ;;  %3133 = vmatprep.subr.bf16.mxu1 %v4432_v43 }
 0x38c   :  { %3110 = vmatpush1.bf16.msra.mxu0 %v3923_v40  ;;  %3135 = vmatpush3.bf16.msra.mxu1 %v4035_v13 }
 0x38d   :  { %3112 = vmatprep.subr.bf16.mxu0 %v3926_v42  ;;  %3136 = vmatprep.subr.bf16.mxu1 %v4432_v43 }
 0x390   :  { %3114 = vmatpush1.bf16.msra.mxu0 %v3942_v48  ;;  %3138 = vmatpush3.bf16.msra.mxu1 %v4047_v16 }
 0x391   :  { %3140 = vmatprep.subr.bf16.mxu0 %v4434_v53  ;;  %3171 = vmatprep.subr.bf16.mxu1 %v4432_v43 }
 0x446   :  { %v1201_v39 = vpop.f32.mrb[14].mxu0  ;;  %v1272_v19 = vpop.f32.mrb[14].mxu1 }
 0x447   :  { %v1276_v30 = vadd.f32 %v1201_v39, %v4093_v17  ;;  %v1203_v27 = vpop.f32.mrb[15].mxu0  ;;  %v2622_v25 = vpop.f32.mrb[15].mxu1  ;;  %v1293_v52 = vadd.f32 %v4105_v44, %v1272_v19 }
 0x448   :  { %v1286_v50 = vadd.f32 %v1284_v45, %v1203_v27 }
 0x449   :  { %v2255_v46 = vmul.f32 -1.442695, %v1276_v30 }
 0x44a   :  { %v2256_v34 = vmul.f32 -1.442695, %v1286_v50 }
 0x44b   :  { %3396 = vpow2.f32 %v2255_v46  ;;  %v1303_v46 = vld [vmem:[#allocation2 + $0x38] sm:$0xf] }
 0x44c   :  { %3398 = vpow2.f32 %v2256_v34 }
 0x455   :  { %v3397_v41 = vpop.eup %3396 }
 0x456   :  { %v1280_v49 = vadd.f32 1.0, %v3397_v41  ;;  %v3399_v55 = vpop.eup %3398 }
 0x457   :  { %v1290_v56 = vadd.f32 1.0, %v3399_v55 }
 0x458   :  { %3400 = vrcp.f32 %v1280_v49 }
 0x459   :  { %3402 = vrcp.f32 %v1290_v56 }
 0x462   :  { %v3401_v21 = vpop.eup %3400 }
 0x463   :  { %v1294_v28 = vmul.f32 %v3401_v21, %v1293_v52  ;;  %v3403_v59 = vpop.eup %3402 }
 0x464   :  { %v1297_v17 = vsub.f32 1.0, %v3403_v59  ;;  %v1299_v3 = vmul.f32 %v3403_v59, %v4197_v22  ;;  %v1622_v59 = vrot.slane %v4095_v26, 4 }
 0x465   :  { %v1295_v33 = vadd.f32 %v1294_v28, %v1134_v35 }
 0x467   :  { %3404 = vtanh.f32 %v1295_v33 }
 0x471   :  { %v3405_v62 = vpop.eup %3404 }
 0x472   :  { %v1298_v1 = vmul.f32 %v3405_v62, %v1297_v17 }
 0x474   :  { %v4241_v24 = vadd.f32 %v1299_v3, %v1298_v1 }
 0x476   :  { %1301 = vst [vmem:[#allocation3 + $0xc] sm:$0xf] %v4241_v24  ;;  %1369 = vmatmul.mubr.f32.vlgmr.msra.gmra.mrb[16].mxu0 %v4241_v24  ;;  %2656 = vmatmul.mubr.f32.vlgmr.msra.gmra.mrb[16].mxu1 %v4241_v24 }
 0x477   :  { %3142 = vmatpush1.bf16.msra.mxu0 %v3732_v32  ;;  %3173 = vmatpush3.bf16.msra.mxu1 %v3958_v54 }
 0x478   :  { %3144 = vmatprep.subr.bf16.mxu0 %v3744_v37  ;;  %3174 = vmatprep.subr.bf16.mxu1 %v4432_v43 }
 0x479   :  { %1537 = vmatprep.mubr.f32.mxu0 %v4433_v58  ;;  %2690 = vmatprep.mubr.msk.f32.mxu1 %vm3548_vm2, %v4433_v58 }
 0x47b   :  { %3146 = vmatpush1.bf16.msra.mxu0 %v3773_v47  ;;  %3176 = vmatpush3.bf16.msra.mxu1 %v3972_v57 }
 0x47c   :  { %3148 = vmatprep.subr.bf16.mxu0 %v3782_v51  ;;  %3177 = vmatprep.subr.bf16.mxu1 %v4432_v43 }
 0x47f   :  { %3150 = vmatpush1.bf16.msra.mxu0 %v3812_v61  ;;  %3179 = vmatpush3.bf16.msra.mxu1 %v3987_v60 }
 0x480   :  { %3152 = vmatprep.subr.bf16.mxu0 %v3816_v63  ;;  %3180 = vmatprep.subr.bf16.mxu1 %v4432_v43 }
 0x483   :  { %3154 = vmatpush1.bf16.msra.mxu0 %v3840_v8  ;;  %3182 = vmatpush3.bf16.msra.mxu1 %v3999_v2 }
 0x484   :  { %3156 = vmatprep.subr.bf16.mxu0 %v3844_v10  ;;  %3183 = vmatprep.subr.bf16.mxu1 %v4432_v43 }
 0x487   :  { %3158 = vmatpush1.bf16.msra.mxu0 %v3869_v18  ;;  %3185 = vmatpush3.bf16.msra.mxu1 %v4011_v5 }
 0x488   :  { %3160 = vmatprep.subr.bf16.mxu0 %v3873_v20  ;;  %3186 = vmatprep.subr.bf16.mxu1 %v4432_v43 }
 0x48b   :  { %3162 = vmatpush1.bf16.msra.mxu0 %v3896_v29  ;;  %3188 = vmatpush3.bf16.msra.mxu1 %v4023_v9 }
 0x48c   :  { %3164 = vmatprep.subr.bf16.mxu0 %v3899_v31  ;;  %3189 = vmatprep.subr.bf16.mxu1 %v4432_v43 }
 0x48f   :  { %3166 = vmatpush1.bf16.msra.mxu0 %v3923_v40  ;;  %3191 = vmatpush3.bf16.msra.mxu1 %v4035_v13 }
 0x490   :  { %3168 = vmatprep.subr.bf16.mxu0 %v3926_v42  ;;  %3192 = vmatprep.subr.bf16.mxu1 %v4432_v43 }
 0x493   :  { %3170 = vmatpush1.bf16.msra.mxu0 %v3942_v48  ;;  %3194 = vmatpush3.bf16.msra.mxu1 %v4047_v16 }
 0x494   :  { %3196 = vmatprep.subr.bf16.mxu0 %v4434_v53  ;;  %3227 = vmatprep.subr.bf16.mxu1 %v4432_v43 }
 0x549   :  { %v1370_v38 = vpop.f32.mrb[16].mxu0  ;;  %v1441_v4 = vpop.f32.mrb[16].mxu1 }
 0x54a   :  { %v1445_v6 = vadd.f32 %v1370_v38, %v4087_v23  ;;  %v1372_v7 = vpop.f32.mrb[17].mxu0  ;;  %v2657_v11 = vpop.f32.mrb[17].mxu1  ;;  %v1462_v27 = vadd.f32 %v4105_v44, %v1441_v4 }
 0x54b   :  { %v1455_v14 = vadd.f32 %v1453_v15, %v1372_v7  ;;  %v1472_v11 = vld [vmem:[#allocation2 + $0x44] sm:$0xf] }
 0x54c   :  { %v2257_v12 = vmul.f32 -1.442695, %v1445_v6 }
 0x54d   :  { %v2258_v36 = vmul.f32 -1.442695, %v1455_v14 }
 0x54e   :  { %3406 = vpow2.f32 %v2257_v12 }
 0x54f   :  { %3408 = vpow2.f32 %v2258_v36 }
 0x558   :  { %v3407_v22 = vpop.eup %3406 }
 0x559   :  { %v1449_v39 = vadd.f32 1.0, %v3407_v22  ;;  %v3409_v19 = vpop.eup %3408 }
 0x55a   :  { %v1459_v30 = vadd.f32 1.0, %v3409_v19 }
 0x55b   :  { %3410 = vrcp.f32 %v1449_v39 }
 0x55c   :  { %3412 = vrcp.f32 %v1459_v30 }
 0x565   :  { %v3411_v25 = vpop.eup %3410 }
 0x566   :  { %v1463_v45 = vmul.f32 %v3411_v25, %v1462_v27  ;;  %v3413_v34 = vpop.eup %3412 }
 0x567   :  { %v1466_v23 = vsub.f32 1.0, %v3413_v34  ;;  %v1468_v55 = vmul.f32 %v3413_v34, %v4241_v24 }
 0x568   :  { %v1464_v50 = vadd.f32 %v1463_v45, %v1303_v46  ;;  %v1995_v45 = vld [vmem:[#allocation9 + $0x20] sm:$0xff]  ;;  %v1996_v46 = vld [vmem:[#allocation9 + $0x28] sm:$0xff] }
 0x569   :  { %v3315_v34 = vpack.c.bf16 %v1996_v46, %v1995_v45 }
 0x56a   :  { %3414 = vtanh.f32 %v1464_v50  ;;  %v1987_v50 = vld [vmem:[#allocation3] sm:$0xff] }
 0x574   :  { %v3415_v41 = vpop.eup %3414 }
 0x575   :  { %v1467_v49 = vmul.f32 %v3415_v41, %v1466_v23  ;;  %v1997_v23 = vld [vmem:[#allocation9 + $0x30] sm:$0xff]  ;;  %v1998_v41 = vld [vmem:[#allocation9 + $0x38] sm:$0xff] }
 0x577   :  { %v4285_v56 = vadd.f32 %v1468_v55, %v1467_v49  ;;  %v3319_v49 = vpack.c.bf16 %v1998_v41, %v1997_v23  ;;  %v1999_v55 = vld [vmem:[#allocation9 + $0x40] sm:$0xff] }
 0x579   :  { %1470 = vst [vmem:[#allocation3 + $0x10] sm:$0xf] %v4285_v56  ;;  %1538 = vmatmul.mubr.f32.vlgmr.msra.gmra.mrb[18].mxu0 %v4285_v56  ;;  %2691 = vmatmul.mubr.f32.vlgmr.msra.gmra.mrb[18].mxu1 %v4285_v56 }
 0x57a   :  { %3198 = vmatpush1.bf16.msra.mxu0 %v3732_v32  ;;  %3229 = vmatpush3.bf16.msra.mxu1 %v3958_v54 }
 0x57b   :  { %3200 = vmatprep.subr.bf16.mxu0 %v3744_v37  ;;  %3230 = vmatprep.subr.bf16.mxu1 %v4432_v43 }
 0x57c   :  { %1706 = vmatprep.mubr.f32.mxu0 %v4433_v58  ;;  %2725 = vmatprep.mubr.msk.f32.mxu1 %vm3548_vm2, %v4433_v58 }
 0x57e   :  { %3202 = vmatpush1.bf16.msra.mxu0 %v3773_v47  ;;  %3232 = vmatpush3.bf16.msra.mxu1 %v3972_v57 }
 0x57f   :  { %3204 = vmatprep.subr.bf16.mxu0 %v3782_v51  ;;  %3233 = vmatprep.subr.bf16.mxu1 %v4432_v43 }
 0x582   :  { %3206 = vmatpush1.bf16.msra.mxu0 %v3812_v61  ;;  %3235 = vmatpush3.bf16.msra.mxu1 %v3987_v60 }
 0x583   :  { %3208 = vmatprep.subr.bf16.mxu0 %v3816_v63  ;;  %3236 = vmatprep.subr.bf16.mxu1 %v4432_v43 }
 0x586   :  { %3210 = vmatpush1.bf16.msra.mxu0 %v3840_v8  ;;  %3238 = vmatpush3.bf16.msra.mxu1 %v3999_v2 }
 0x587   :  { %3212 = vmatprep.subr.bf16.mxu0 %v3844_v10  ;;  %3239 = vmatprep.subr.bf16.mxu1 %v4432_v43 }
 0x58a   :  { %3214 = vmatpush1.bf16.msra.mxu0 %v3869_v18  ;;  %3241 = vmatpush3.bf16.msra.mxu1 %v4011_v5 }
 0x58b   :  { %3216 = vmatprep.subr.bf16.mxu0 %v3873_v20  ;;  %3242 = vmatprep.subr.bf16.mxu1 %v4432_v43 }
 0x58e   :  { %3218 = vmatpush1.bf16.msra.mxu0 %v3896_v29  ;;  %3244 = vmatpush3.bf16.msra.mxu1 %v4023_v9 }
 0x58f   :  { %3220 = vmatprep.subr.bf16.mxu0 %v3899_v31  ;;  %3245 = vmatprep.subr.bf16.mxu1 %v4432_v43 }
 0x592   :  { %3222 = vmatpush1.bf16.msra.mxu0 %v3923_v40  ;;  %3247 = vmatpush3.bf16.msra.mxu1 %v4035_v13 }
 0x593   :  { %3224 = vmatprep.subr.bf16.mxu0 %v3926_v42  ;;  %3248 = vmatprep.subr.bf16.mxu1 %v4432_v43 }
 0x596   :  { %3226 = vmatpush1.bf16.msra.mxu0 %v3942_v48  ;;  %3250 = vmatpush3.bf16.msra.mxu1 %v4047_v16 }
 0x597   :  { %3252 = vmatprep.subr.bf16.mxu0 %v4434_v53  ;;  %3283 = vmatprep.subr.bf16.mxu1 %v4432_v43 }
 0x64c   :  { %v1539_v52 = vpop.f32.mrb[18].mxu0  ;;  %v1610_v21 = vpop.f32.mrb[18].mxu1 }
 0x64d   :  { %v1614_v28 = vadd.f32 %v1539_v52, %v4095_v26  ;;  %v1541_v35 = vpop.f32.mrb[19].mxu0  ;;  %v2692_v33 = vpop.f32.mrb[19].mxu1  ;;  %v1631_v4 = vadd.f32 %v4105_v44, %v1610_v21  ;;  %v2001_v21 = vld [vmem:[#allocation9 + $0x50] sm:$0xff] }
 0x64e   :  { %v1624_v62 = vadd.f32 %v1622_v59, %v1541_v35  ;;  %v2003_v33 = vld [vmem:[#allocation9 + $0x60] sm:$0xff]  ;;  %v2004_v59 = vld [vmem:[#allocation9 + $0x68] sm:$0xff] }
 0x64f   :  { %v2259_v17 = vmul.f32 -1.442695, %v1614_v28  ;;  %v2002_v28 = vld [vmem:[#allocation9 + $0x58] sm:$0xff] }
 0x650   :  { %v2260_v1 = vmul.f32 -1.442695, %v1624_v62  ;;  %v3327_v35 = vpack.c.bf16 %v2002_v28, %v2001_v21  ;;  %v2005_v62 = vld [vmem:[#allocation9 + $0x70] sm:$0xff] }
 0x651   :  { %3416 = vpow2.f32 %v2259_v17  ;;  %v3331_v17 = vpack.c.bf16 %v2004_v59, %v2003_v33 }
 0x652   :  { %3418 = vpow2.f32 %v2260_v1  ;;  %v2006_v1 = vld [vmem:[#allocation9 + $0x78] sm:$0xff] }
 0x65b   :  { %v3417_v3 = vpop.eup %3416 }
 0x65c   :  { %v1618_v24 = vadd.f32 1.0, %v3417_v3  ;;  %v3419_v38 = vpop.eup %3418  ;;  %v3335_v3 = vpack.c.bf16 %v2006_v1, %v2005_v62 }
 0x65d   :  { %v1628_v53 = vadd.f32 1.0, %v3419_v38 }
 0x65e   :  { %3420 = vrcp.f32 %v1618_v24  ;;  %v1988_v24 = vld [vmem:[#allocation3 + $0x8] sm:$0xff] }
 0x65f   :  { %3422 = vrcp.f32 %v1628_v53  ;;  %v1983_v53 = vld [vmem:[#allocation7] sm:$0xff] }
 0x668   :  { %v3421_v6 = vpop.eup %3420 }
 0x669   :  { %v1632_v7 = vmul.f32 %v3421_v6, %v1631_v4  ;;  %v3423_v12 = vpop.eup %3422  ;;  %v1984_v4 = vld [vmem:[#allocation7 + $0x8] sm:$0xff]  ;;  %v1985_v6 = vld [vmem:[#allocation7 + $0x10] sm:$0xff] }
 0x66a   :  { %v1635_v26 = vsub.f32 1.0, %v3423_v12  ;;  %v1637_v22 = vmul.f32 %v3423_v12, %v4285_v56  ;;  %v2000_v56 = vld [vmem:[#allocation9 + $0x48] sm:$0xff] }
 0x66b   :  { %v1633_v15 = vadd.f32 %v1632_v7, %v1472_v11  ;;  %v3323_v52 = vpack.c.bf16 %v2000_v56, %v1999_v55  ;;  %v3339_v7 = vpack.c.bf16 %v1984_v4, %v1983_v53  ;;  %v1986_v11 = vld [vmem:[#allocation7 + $0x18] sm:$0xff] }
 0x66c   :  { %v3343_v12 = vpack.c.bf16 %v1986_v11, %v1985_v6 }
 0x66d   :  { %3424 = vtanh.f32 %v1633_v15  ;;  %v1981_v15 = vld [vmem:[%s4412_s0 + $0x10] sm:$0xff] }
 0x677   :  { %v3425_v14 = vpop.eup %3424 }
 0x678   :  { %v1636_v36 = vmul.f32 %v3425_v14, %v1635_v26  ;;  %v1982_v26 = vld [vmem:[%s4412_s0 + $0x18] sm:$0xff] }
 0x67a   :  { %v4329_v39 = vadd.f32 %v1637_v22, %v1636_v36  ;;  %v3446_v22 = vld [vmem:[#allocation2 + $0x54] sm:$0xff] }
 0x67c   :  { %1639 = vst [vmem:[#allocation3 + $0x14] sm:$0xf] %v4329_v39  ;;  %1707 = vmatmul.mubr.f32.vlgmr.msra.gmra.mrb[20].mxu0 %v4329_v39  ;;  %2726 = vmatmul.mubr.f32.vlgmr.msra.gmra.mrb[20].mxu1 %v4329_v39 }
 0x67d   :  { %3254 = vmatpush1.bf16.msra.mxu0 %v3732_v32  ;;  %3285 = vmatpush3.bf16.msra.mxu1 %v3958_v54  ;;  %v1991_v32 = vld [vmem:[#allocation9] sm:$0xff] }
 0x67e   :  { %3256 = vmatprep.subr.bf16.mxu0 %v3744_v37  ;;  %3286 = vmatprep.subr.bf16.mxu1 %v4432_v43  ;;  %v1992_v37 = vld [vmem:[#allocation9 + $0x8] sm:$0xff] }
 0x67f   :  { %1875 = vmatprep.mubr.f32.mxu0 %v4433_v58  ;;  %2760 = vmatprep.mubr.msk.f32.mxu1 %vm3548_vm2, %v4433_v58  ;;  %v1994_v58 = vld [vmem:[#allocation9 + $0x18] sm:$0xff] }
 0x681   :  { %3258 = vmatpush1.bf16.msra.mxu0 %v3773_v47  ;;  %3288 = vmatpush3.bf16.msra.mxu1 %v3972_v57  ;;  %v3307_v47 = vpack.c.bf16 %v1992_v37, %v1991_v32 }
 0x682   :  { %3260 = vmatprep.subr.bf16.mxu0 %v3782_v51  ;;  %3289 = vmatprep.subr.bf16.mxu1 %v4432_v43 }
 0x683   :  { %v1989_v38 = vld [vmem:[#allocation3 + $0x10] sm:$0xff] }
 0x685   :  { %3262 = vmatpush1.bf16.msra.mxu0 %v3812_v61  ;;  %3291 = vmatpush3.bf16.msra.mxu1 %v3987_v60 }
 0x686   :  { %3264 = vmatprep.subr.bf16.mxu0 %v3816_v63  ;;  %3292 = vmatprep.subr.bf16.mxu1 %v4432_v43 }
 0x689   :  { %3266 = vmatpush1.bf16.msra.mxu0 %v3840_v8  ;;  %3294 = vmatpush3.bf16.msra.mxu1 %v3999_v2 }
 0x68a   :  { %3268 = vmatprep.subr.bf16.mxu0 %v3844_v10  ;;  %3295 = vmatprep.subr.bf16.mxu1 %v4432_v43 }
 0x68d   :  { %3270 = vmatpush1.bf16.msra.mxu0 %v3869_v18  ;;  %3297 = vmatpush3.bf16.msra.mxu1 %v4011_v5  ;;  %v1791_v18 = vrot.slane %v4089_v0, 4  ;;  %v1641_v5 = vld [vmem:[#allocation2 + $0x50] sm:$0xf] }
 0x68e   :  { %3272 = vmatprep.subr.bf16.mxu0 %v3873_v20  ;;  %3298 = vmatprep.subr.bf16.mxu1 %v4432_v43 }
 0x691   :  { %3274 = vmatpush1.bf16.msra.mxu0 %v3896_v29  ;;  %3300 = vmatpush3.bf16.msra.mxu1 %v4023_v9 }
 0x692   :  { %3276 = vmatprep.subr.bf16.mxu0 %v3899_v31  ;;  %3301 = vmatprep.subr.bf16.mxu1 %v4432_v43 }
 0x695   :  { %3278 = vmatpush1.bf16.msra.mxu0 %v3923_v40  ;;  %3303 = vmatpush3.bf16.msra.mxu1 %v4035_v13 }
 0x696   :  { %3280 = vmatprep.subr.bf16.mxu0 %v3926_v42  ;;  %3304 = vmatprep.subr.bf16.mxu1 %v4432_v43  ;;  %v1993_v43 = vld [vmem:[#allocation9 + $0x10] sm:$0xff] }
 0x697   :  { %v3311_v25 = vpack.c.bf16 %v1994_v58, %v1993_v43  ;;  %v2189_v58 = vld [vmem:[%s4422_s10] sm:$0xf] }
 0x699   :  { %3282 = vmatpush1.bf16.msra.mxu0 %v3942_v48  ;;  %3306 = vmatpush3.bf16.msra.mxu1 %v4047_v16 }
 0x69a   :  { %3308 = vmatprep.subr.bf16.mxu0 %v3307_v47  ;;  %3347 = vmatprep.subr.bf16.mxu1 %v3339_v7 }
 0x74f   :  { %v1708_v51 = vpop.f32.mrb[20].mxu0  ;;  %v1779_v61 = vpop.f32.mrb[20].mxu1 }
 0x750   :  { %v1783_v63 = vadd.f32 %v1708_v51, %v4089_v0  ;;  %v1710_v8 = vpop.f32.mrb[21].mxu0  ;;  %v2727_v10 = vpop.f32.mrb[21].mxu1  ;;  %v1800_v57 = vadd.f32 %v4105_v44, %v1779_v61 }
 0x751   :  { %v1793_v29 = vadd.f32 %v1791_v18, %v1710_v8 }
 0x752   :  { %v2261_v20 = vmul.f32 -1.442695, %v1783_v63 }
 0x753   :  { %v2262_v31 = vmul.f32 -1.442695, %v1793_v29 }
 0x754   :  { %3426 = vpow2.f32 %v2261_v20 }
 0x755   :  { %3428 = vpow2.f32 %v2262_v31 }
 0x75e   :  { %v3427_v40 = vpop.eup %3426 }
 0x75f   :  { %v1787_v42 = vadd.f32 1.0, %v3427_v40  ;;  %v3429_v48 = vpop.eup %3428 }
 0x760   :  { %v1797_v54 = vadd.f32 1.0, %v3429_v48 }
 0x761   :  { %3430 = vrcp.f32 %v1787_v42  ;;  %v1810_v42 = vld [vmem:[#allocation2 + $0x5c] sm:$0xf] }
 0x762   :  { %3432 = vrcp.f32 %v1797_v54 }
 0x76b   :  { %v3431_v60 = vpop.eup %3430 }
 0x76c   :  { %v1801_v2 = vmul.f32 %v3431_v60, %v1800_v57  ;;  %v3433_v13 = vpop.eup %3432 }
 0x76d   :  { %v1804_v0 = vsub.f32 1.0, %v3433_v13  ;;  %v1806_v30 = vmul.f32 %v3433_v13, %v4329_v39 }
 0x76e   :  { %v1802_v9 = vadd.f32 %v1801_v2, %v1641_v5 }
 0x770   :  { %3434 = vtanh.f32 %v1802_v9 }
 0x77a   :  { %v3435_v16 = vpop.eup %3434 }
 0x77b   :  { %v1805_v19 = vmul.f32 %v3435_v16, %v1804_v0  ;;  %v1980_v0 = vld [vmem:[%s4412_s0 + $0x8] sm:$0xff] }
 0x77d   :  { %v4371_v27 = vadd.f32 %v1806_v30, %v1805_v19  ;;  %v2193_v19 = vrot.slane %v2189_v58, 4 }
 0x77f   :  { %1808 = vst [vmem:[#allocation3 + $0x18] sm:$0xf] %v4371_v27  ;;  %1876 = vmatmul.mubr.f32.vlgmr.msra.gmra.mrb[22].mxu0 %v4371_v27  ;;  %2761 = vmatmul.mubr.f32.vlgmr.msra.gmra.mrb[22].mxu1 %v4371_v27 }
 0x780   :  { %3310 = vmatpush3.bf16.msra.mxu0 %v3307_v47  ;;  %2795 = vmatprep.mubr.f32.mxu0 %v1987_v50  ;;  %v1960_v47 = vrot.slane %v3446_v22, 4 }
 0x781   :  { %3312 = vmatprep.subr.bf16.mxu0 %v3311_v25  ;;  %2812 = vmatprep.mubr.msk.f32.mxu1 %vm96_vm0, %v1981_v15 }
 0x782   :  { %3349 = vmatpush3.bf16.msra.mxu1 %v3339_v7 }
 0x783   :  { %3348 = vmatprep.subr.bf16.mxu1 %v3343_v12 }
 0x784   :  { %3314 = vmatpush3.bf16.msra.mxu0 %v3311_v25 }
 0x785   :  { %3316 = vmatprep.subr.bf16.mxu0 %v3315_v34 }
 0x786   :  { %3350 = vmatpush3.bf16.msra.mxu1 %v3343_v12 }
 0x788   :  { %3318 = vmatpush3.bf16.msra.mxu0 %v3315_v34 }
 0x789   :  { %3320 = vmatprep.subr.bf16.mxu0 %v3319_v49  ;;  %2813 = vmatmul.mubr.msk.f32.vlgmr.msra.gmra.mrb[24].mxu1 %vm96_vm0, %v1982_v26 }
 0x78c   :  { %3322 = vmatpush3.bf16.msra.mxu0 %v3319_v49 }
 0x78d   :  { %3324 = vmatprep.subr.bf16.mxu0 %v3323_v52 }
 0x790   :  { %3326 = vmatpush3.bf16.msra.mxu0 %v3323_v52 }
 0x791   :  { %3328 = vmatprep.subr.bf16.mxu0 %v3327_v35 }
 0x794   :  { %3330 = vmatpush3.bf16.msra.mxu0 %v3327_v35 }
 0x795   :  { %3332 = vmatprep.subr.bf16.mxu0 %v3331_v17 }
 0x798   :  { %3334 = vmatpush3.bf16.msra.mxu0 %v3331_v17 }
 0x799   :  { %3336 = vmatprep.subr.bf16.mxu0 %v3335_v3 }
 0x79c   :  { %3338 = vmatpush3.bf16.msra.mxu0 %v3335_v3 }
 0x79d   :  { %3340 = vmatprep.subr.bf16.mxu0 %v3339_v7 }
 0x79f   :  { %2796 = vmatmul.mubr.f32.vlgmr.msra.gmra.mrb[24].mxu0 %v1988_v24 }
 0x7a0   :  { %2798 = vmatprep.mubr.f32.mxu0 %v1989_v38  ;;  %3342 = vmatpush3.bf16.msra.mxu0 %v3339_v7 }
 0x7a1   :  { %3344 = vmatprep.subr.bf16.mxu0 %v3343_v12 }
 0x7a4   :  { %3346 = vmatpush3.bf16.msra.mxu0 %v3343_v12 }
 0x852   :  { %v1877_v14 = vpop.f32.mrb[22].mxu0  ;;  %v1948_v36 = vpop.f32.mrb[22].mxu1 }
 0x853   :  { %v1952_v39 = vadd.f32 %v3446_v22, %v1877_v14  ;;  %v1879_v32 = vpop.f32.mrb[23].mxu0  ;;  %v2762_v37 = vpop.f32.mrb[23].mxu1  ;;  %v1969_v29 = vadd.f32 %v4105_v44, %v1948_v36  ;;  %v1979_v44 = vld [vmem:[%s4412_s0] sm:$0xff] }
 0x854   :  { %v1962_v61 = vadd.f32 %v1960_v47, %v1879_v32 }
 0x855   :  { %v2263_v51 = vmul.f32 -1.442695, %v1952_v39 }
 0x856   :  { %v2264_v63 = vmul.f32 -1.442695, %v1962_v61 }
 0x857   :  { %3436 = vpow2.f32 %v2263_v51 }
 0x858   :  { %3438 = vpow2.f32 %v2264_v63 }
 0x85c   :  { %v2814_v16 = vpop.f32.mrb[24].mxu1 }
 0x85d   :  { %v2180_v43 = vpop.f32.mrb[25].mxu1 }
 0x861   :  { %v3437_v8 = vpop.eup %3436 }
 0x862   :  { %v1956_v10 = vadd.f32 1.0, %v3437_v8  ;;  %v3439_v18 = vpop.eup %3438 }
 0x863   :  { %v1966_v20 = vadd.f32 1.0, %v3439_v18 }
 0x864   :  { %3440 = vrcp.f32 %v1956_v10 }
 0x865   :  { %3442 = vrcp.f32 %v1966_v20 }
 0x86e   :  { %v3441_v31 = vpop.eup %3440 }
 0x86f   :  { %v1970_v40 = vmul.f32 %v3441_v31, %v1969_v29  ;;  %v3443_v54 = vpop.eup %3442 }
 0x870   :  { %v1973_v57 = vsub.f32 1.0, %v3443_v54  ;;  %v1975_v5 = vmul.f32 %v3443_v54, %v4371_v27 }
 0x871   :  { %v1971_v48 = vadd.f32 %v1970_v40, %v1810_v42 }
 0x873   :  { %3444 = vtanh.f32 %v1971_v48 }
 0x87d   :  { %v3445_v60 = vpop.eup %3444 }
 0x87e   :  { %v1974_v2 = vmul.f32 %v3445_v60, %v1973_v57 }
 0x880   :  { %v1976_v9 = vadd.f32 %v1975_v5, %v1974_v2 }
 0x882   :  { %1977 = vst [vmem:[#allocation3 + $0x1c] sm:$0xf] %v1976_v9  ;;  %1978 = vst [vmem:[%s4424_s12] sm:$0xf] %v1976_v9  ;;  %s3549_s12 = smov [#allocation10]  }
 0x883   :  { %s2221_s3 = sshll.u32 %s3549_s12, 4  ;;  %s2222_s3 = int_to_ptr.vmem [resolvable:$true] %s2221_s3 }
 0x884   :  { %s3513_s0 = scalar_lea.vmem %s2222_s3, 512  ;;  %p3518_p11 = scmp.lt.s32.totalorder %s2222_s3, %s2222_s3 }
 0x885   :  { %p3514_p10 = scmp.ne.s32.totalorder %s2222_s3, %s3513_s0  ;;  %p3519_p12 = scmp.lt.s32.totalorder %s3513_s0, %s3513_s0 }
 0x887   :  { %p3520_p13 = por %p3519_p12, %p3518_p11 }
 0x889   :  { %v1990_v13 = vld [vmem:[#allocation3 + $0x18] sm:$0xff]  ;;  %p3521_p0 = pnand %p3520_p13, %p3514_p10 }
 0x88a   :  { %2799 = vmatmul.mubr.f32.gmra.mrb[26].mxu0 %v1990_v13 }
 0x88b   :  { %2809 = vmatprep.mubr.msk.f32.mxu0 %vm96_vm0, %v1979_v44 }
 0x88e   :  { %2810 = vmatmul.mubr.msk.f32.vlgmr.msra.gmra.mrb[24].mxu0 %vm96_vm0, %v1980_v0 }
 0x95d   :  { %v2800_v30 = vpop.f32.mrb[26].mxu0 }
 0x95e   :  { %v2186_v27 = vadd.f32 %v2814_v16, %v2800_v30  ;;  %v2083_v25 = vpop.f32.mrb[27].mxu0 }
 0x95f   :  { %v2181_v45 = vadd.f32 %v2180_v43, %v2083_v25 }
 0x960   :  { %v2210_v46 = vadd.f32 %v2189_v58, %v2186_v27  ;;  %v2213_v50 = vadd.f32 %v2193_v19, %v2186_v27 }
 0x961   :  { %v2204_v34 = vadd.f32 %v2189_v58, %v2181_v45  ;;  %v2207_v23 = vadd.f32 %v2193_v19, %v2181_v45  ;;  %v2811_v41 = vpop.f32.mrb[24].mxu0 }
 0x962   :  { %2212 = vst [vmem:[#allocation10 + $0x18] sm:$0xf] %v2210_v46  ;;  %2215 = vst [vmem:[#allocation10 + $0x18] sm:$0xf0] %v2213_v50  ;;  %v2198_v49 = vadd.f32 %v2811_v41, %v2189_v58  ;;  %v2201_v55 = vadd.f32 %v2811_v41, %v2193_v19  ;;  %v2170_v56 = vpop.f32.mrb[25].mxu0 }
 0x963   :  { %2206 = vst [vmem:[#allocation10 + $0x10] sm:$0xf] %v2204_v34  ;;  %2209 = vst [vmem:[#allocation10 + $0x10] sm:$0xf0] %v2207_v23  ;;  %v2190_v52 = vadd.f32 %v2189_v58, %v2170_v56  ;;  %v2195_v21 = vadd.f32 %v2193_v19, %v2170_v56 }
 0x964   :  { %2200 = vst [vmem:[#allocation10 + $0x8] sm:$0xf] %v2198_v49  ;;  %2203 = vst [vmem:[#allocation10 + $0x8] sm:$0xf0] %v2201_v55 }
 0x965   :  { %2191 = vst [vmem:[#allocation10] sm:$0xf] %v2190_v52  ;;  %2197 = vst [vmem:[#allocation10] sm:$0xf0] %v2195_v21 }
 0x966   :  { %3524 = shalt.err (!%p3521_p0)
}
 0x967   :  { %s3525_s30 = scalar_lea.hbm %s4423_s11, 512 }
 0x968   :  { %p3526_p1 = scmp.ne.s32.totalorder %s4423_s11, %s3525_s30  ;;  %p3529_p2 = scmp.lt.u32.totalorder %s3525_s30, %s4423_s11 }
 0x96a   :  { %p3531_p3 = pnand %p3529_p2, %p3526_p1 }
 0x96c   :  { %3534 = shalt.err (!%p3531_p3)
}
 0x96d   :  { %s3550_s21 = smov 64   ;;  %s3551_s4 = smov 4  }
 0x96e   :  { %2227 = dma.vmem_to_hbm [thread:$0]  %s2222_s3, 512, %s4423_s11, [#allocation6], %s3550_s21, %s3550_s21, %s3551_s4  }
 0x96f   :  { %3539 = dma.done.wait [#allocation6], 512  }
 0x970   :  { %3540 = vsyncadd [#allocation6], 4294966784 }
 0x971   :  { %2235 = vsyncpa [#allocation5], 1 }
 0x972   :  { %2236 = vsyncpa [#allocation8], 1 }
 0x973   :  { %2237 = vsyncpa [#allocation6], 1 }

</bundles_post_ra>
